<compile_context>
chip_gen: v7x
topology: tpu7x:2x2x1
jax: 0.10.0
libtpu: 0.0.40
codegen_flags: <defaults>
</compile_context>

<pallas_src>
import functools

import numpy as np

import jax
import jax.numpy as jnp
from jax.experimental import pallas as pl
from jax.experimental.pallas import tpu as pltpu

EPS = 1e-5


# ----------------------------------------------------------------------------
# Fused kernel: conv3x3 -> (+offset) -> ReLU -> conv3x3 -> (+offset) -> ReLU
#               -> maxpool2x2 (via precomputed one-hot selection matmul).
# Layout: channels on sublanes, flat (batch, spatial) on lanes.
# ----------------------------------------------------------------------------
def _encoder_kernel(x_ref, w1_ref, t1_ref, w2_ref, t2_ref, sel_ref,
                    xo_ref, po_ref, *, B, H, W):
    # x_ref   : (Cin_p, B*H*W)
    # w*_ref  : (Cout, 9*Cin_p) / (Cout, 9*Cout)   im2col weights, BN-scale folded
    # t*_ref  : (Cout, 1)                          folded BN/bias offset
    # sel_ref : (B*H*W, B*(H//2)*(W//2))           one-hot pool-anchor selection
    # xo_ref  : (Cout, B*H*W)
    # po_ref  : (Cout, B*(H//2)*(W//2))
    Nimg = H * W
    NT = B * Nimg
    log2_w = W.bit_length() - 1          # H, W are powers of two (asserted outside)

    # Per-lane per-image (h, w) coordinates -- computed ONCE per invocation.
    idx = jax.lax.broadcasted_iota(jnp.int32, (1, NT), 1)
    idx_img = jnp.bitwise_and(idx, Nimg - 1)           # per-image flat index
    hh = jnp.right_shift(idx_img, log2_w)
    ww = jnp.bitwise_and(idx_img, W - 1)

    # 9 taps: (lane-roll amount, border-valid mask).  Masks built once, shared
    # by both convolutions.  Because border lanes are masked, lane rolls that
    # wrap across image (or batch) boundaries never contaminate a valid output.
    taps = []
    for kh in range(3):
        for kw in range(3):
            dh, dw = kh - 1, kw - 1
            s = dh * W + dw                            # flat-index shift of this tap
            shift = (-s) % NT
            masks = []
            if dh < 0:
                masks.append(hh >= -dh)
            elif dh > 0:
                masks.append(hh < H - dh)
            if dw < 0:
                masks.append(ww >= -dw)
            elif dw > 0:
                masks.append(ww < W - dw)
            valid = functools.reduce(jnp.logical_and, masks) if masks else None
            taps.append((shift, valid))

    def conv3x3_bias_relu(inp, wmat, offset):
        # inp: (C, NT). Build the (9*C, NT) im2col patch matrix with lane rolls
        # + precomputed border masks, then ONE MXU matmul (K = 9*C).
        pieces = []
        for shift, valid in taps:
            shifted = inp if shift == 0 else pltpu.roll(inp, shift, axis=1)
            if valid is not None:
                shifted = jnp.where(valid, shifted, 0.0)
            pieces.append(shifted)
        pmat = jnp.concatenate(pieces, axis=0)                       # (9*C, NT)
        z = jnp.dot(wmat, pmat, preferred_element_type=jnp.float32)  # (Cout, NT)
        return jnp.maximum(z + offset, 0.0)

    x = x_ref[...]                                                   # (Cin_p, NT)
    y1 = conv3x3_bias_relu(x, w1_ref[...], t1_ref[...])
    y2 = conv3x3_bias_relu(y1, w2_ref[...], t2_ref[...])
    xo_ref[...] = y2                                                 # lane-dense store

    # ---- MaxPool2d(k=2, s=2): 2x2-window max anchored at every flat position;
    # only even-h/even-w anchors are picked by `sel`, so roll wrap-around (image
    # or batch seams) never contaminates a selected value.
    m = jnp.maximum(jnp.maximum(y2, pltpu.roll(y2, NT - 1, axis=1)),
                    jnp.maximum(pltpu.roll(y2, NT - W, axis=1),
                                pltpu.roll(y2, NT - W - 1, axis=1)))
    # Compaction to pooled anchors with the host-precomputed one-hot matrix.
    po_ref[...] = jnp.dot(m, sel_ref[...], preferred_element_type=jnp.float32)


# ----------------------------------------------------------------------------
# EncoderBlock forward (NCHW in, NCHW out) -- single pallas_call, single step.
# ----------------------------------------------------------------------------
@jax.jit
def encoder_block(params, x_nchw):
    B, Cin, H, W = x_nchw.shape
    assert H % 2 == 0 and W % 2 == 0
    assert (H & (H - 1)) == 0 and (W & (W - 1)) == 0, "power-of-two H, W"
    Nimg = H * W
    NT = B * Nimg
    HP, WP = H // 2, W // 2
    NP = HP * WP
    PT = B * NP
    Cout = params["w1s"].shape[0]
    Cin_p = params["w1s"].shape[1] // 9            # Cin padded to a multiple of 8

    # Batch folded onto the lane axis: (B, Cin, H, W) -> (Cin, B*H*W).
    x_flat = jnp.transpose(x_nchw, (1, 0, 2, 3)).reshape(Cin, NT).astype(jnp.float32)
    if Cin_p > Cin:
        x_flat = jnp.pad(x_flat, ((0, Cin_p - Cin), (0, 0)))

    # Host-side (trace-time) one-hot pool selection matrix: sel[src, q] = 1.
    sel_np = np.zeros((NT, PT), np.float32)
    for b in range(B):
        for ph in range(HP):
            for pw in range(WP):
                q = b * NP + ph * WP + pw
                src = b * Nimg + (2 * ph) * W + (2 * pw)
                sel_np[src, q] = 1.0
    sel = jnp.asarray(sel_np)

    kernel = functools.partial(_encoder_kernel, B=B, H=H, W=W)
    x_out, p_out = pl.pallas_call(
        kernel,
        out_shape=(jax.ShapeDtypeStruct((Cout, NT), jnp.float32),
                   jax.ShapeDtypeStruct((Cout, PT), jnp.float32)),
        grid=(1,),
        in_specs=[
            pl.BlockSpec((Cin_p, NT), lambda i: (0, 0)),
            pl.BlockSpec((Cout, 9 * Cin_p), lambda i: (0, 0)),
            pl.BlockSpec((Cout, 1), lambda i: (0, 0)),
            pl.BlockSpec((Cout, 9 * Cout), lambda i: (0, 0)),
            pl.BlockSpec((Cout, 1), lambda i: (0, 0)),
            pl.BlockSpec((NT, PT), lambda i: (0, 0)),
        ],
        out_specs=(pl.BlockSpec((Cout, NT), lambda i: (0, 0)),
                   pl.BlockSpec((Cout, PT), lambda i: (0, 0))),
        compiler_params=pltpu.CompilerParams(
            dimension_semantics=("arbitrary",)),
    )(x_flat, params["w1s"], params["t1"], params["w2s"], params["t2"], sel)

    # Back to PyTorch NCHW (tiny XLA transposes outside the kernel).
    x_out = x_out.reshape(Cout, B, H, W).transpose(1, 0, 2, 3)
    p_out = p_out.reshape(Cout, B, HP, WP).transpose(1, 0, 2, 3)
    return x_out, p_out


# ----------------------------------------------------------------------------
# Deterministic synthetic parameters (shapes from the nn.Module __init__).
# ----------------------------------------------------------------------------
def init_params(key, in_channels, out_channels):
    ks = jax.random.split(key, 12)
    n = lambda k, shape, s: s * jax.random.normal(k, shape, jnp.float32)

    w1 = n(ks[0], (out_channels, in_channels, 3, 3), 0.2)     # PyTorch OIHW
    b1 = n(ks[1], (out_channels,), 0.1)
    g1 = 1.0 + n(ks[2], (out_channels,), 0.1)
    beta1 = n(ks[3], (out_channels,), 0.1)
    m1 = n(ks[4], (out_channels,), 0.1)
    v1 = 1.0 + jnp.abs(n(ks[5], (out_channels,), 0.2))

    w2 = n(ks[6], (out_channels, out_channels, 3, 3), 0.2)    # PyTorch OIHW
    b2 = n(ks[7], (out_channels,), 0.1)
    g2 = 1.0 + n(ks[8], (out_channels,), 0.1)
    beta2 = n(ks[9], (out_channels,), 0.1)
    m2 = n(ks[10], (out_channels,), 0.1)
    v2 = 1.0 + jnp.abs(n(ks[11], (out_channels,), 0.2))

    # Fold conv bias + BN (eval mode) into per-channel scale / offset.
    s1 = g1 / jnp.sqrt(v1 + EPS)
    t1 = (b1 - m1) * s1 + beta1
    s2 = g2 / jnp.sqrt(v2 + EPS)
    t2 = (b2 - m2) * s2 + beta2

    # Pad Cin to a multiple of 8 (tile-aligned sublane concat in the kernel).
    cin_p = ((in_channels + 7) // 8) * 8
    w1p = jnp.pad(w1, ((0, 0), (0, cin_p - in_channels), (0, 0), (0, 0)))

    # im2col weight layout: Wmat[co, (kh*3+kw)*C + ci] = W[co, ci, kh, kw],
    # with the BN scale folded in (scale commutes with the linear conv).
    w1m = jnp.transpose(w1p, (0, 2, 3, 1)).reshape(out_channels, 9 * cin_p)
    w2m = jnp.transpose(w2, (0, 2, 3, 1)).reshape(out_channels, 9 * out_channels)
    w1s = w1m * s1[:, None]
    w2s = w2m * s2[:, None]

    params = dict(w1s=w1s, t1=t1.reshape(out_channels, 1),
                  w2s=w2s, t2=t2.reshape(out_channels, 1))
    raw = dict(w1=w1, b1=b1, g1=g1, beta1=beta1, m1=m1, v1=v1,
               w2=w2, b2=b2, g2=g2, beta2=beta2, m2=m2, v2=v2)
    return params, raw


# ----------------------------------------------------------------------------
# Pure-JAX reference (independent code path) for verification.
# ----------------------------------------------------------------------------
def reference(raw, x_nchw):
    x = x_nchw.astype(jnp.float32)

    def conv(z, w, b):
        out = jax.lax.conv_general_dilated(
            z, w, window_strides=(1, 1), padding=((1, 1), (1, 1)),
            dimension_numbers=('NCHW', 'OIHW', 'NCHW'),
            precision=jax.lax.Precision.HIGHEST)
        return out + b[None, :, None, None]

    def bn(z, g, bb, m, v):
        return (g[None, :, None, None] * (z - m[None, :, None, None])
                / jnp.sqrt(v[None, :, None, None] + EPS)
                + bb[None, :, None, None])

    z = jnp.maximum(bn(conv(x, raw["w1"], raw["b1"]),
                       raw["g1"], raw["beta1"], raw["m1"], raw["v1"]), 0.0)
    z = jnp.maximum(bn(conv(z, raw["w2"], raw["b2"]),
                       raw["g2"], raw["beta2"], raw["m2"], raw["v2"]), 0.0)
    B, C, H, W = z.shape
    p = jnp.max(z.reshape(B, C, H // 2, 2, W // 2, 2), axis=(3, 5))
    return z, p


if __name__ == "__main__":
    B, in_channels, out_channels, H, W = 2, 8, 16, 16, 16
    key = jax.random.PRNGKey(0)
    kx, kp = jax.random.split(key)

    x = jax.random.normal(kx, (B, in_channels, H, W), jnp.float32)
    params, raw = init_params(kp, in_channels, out_channels)

    x_out, p_out = encoder_block(params, x)
    x_out, p_out = jax.block_until_ready((x_out, p_out))
    assert x_out.shape == (B, out_channels, H, W), x_out.shape
    assert p_out.shape == (B, out_channels, H // 2, W // 2), p_out.shape

    x_ref_, p_ref_ = reference(raw, x)
    err_x = float(jnp.max(jnp.abs(x_out - x_ref_)))
    err_p = float(jnp.max(jnp.abs(p_out - p_ref_)))
    if not (jnp.allclose(x_out, x_ref_, atol=1e-3, rtol=1e-3)
            and jnp.allclose(p_out, p_ref_, atol=1e-3, rtol=1e-3)):
        raise AssertionError(
            f"mismatch vs reference: conv-block err {err_x:e}, pool err {err_p:e}")

    print("KERNEL_OK")
</pallas_src>

<mosaic_0001>
module attributes {stable_mosaic.version = 11 : i64} {
  func.func @_encoder_kernel(%arg0: i32, %arg1: memref<8x512xf32, #tpu.memory_space<vmem>>, %arg2: memref<16x72xf32, #tpu.memory_space<vmem>>, %arg3: memref<16x1xf32, #tpu.memory_space<vmem>>, %arg4: memref<16x144xf32, #tpu.memory_space<vmem>>, %arg5: memref<16x1xf32, #tpu.memory_space<vmem>>, %arg6: memref<512x128xf32, #tpu.memory_space<vmem>>, %arg7: memref<16x512xf32, #tpu.memory_space<vmem>>, %arg8: memref<16x128xf32, #tpu.memory_space<vmem>>) attributes {dimension_semantics = [#tpu.dimension_semantics<arbitrary>], iteration_bounds = array<i64: 1>, scalar_prefetch = 0 : i64, scratch_operands = 0 : i64, tpu.core_type = #tpu.core_type<tc>, window_params = [{pipeline_mode = #tpu.pipeline_mode<synchronous>, transform_indices = @transform_0, window_bounds = array<i64: 8, 512>}, {pipeline_mode = #tpu.pipeline_mode<synchronous>, transform_indices = @transform_1, window_bounds = array<i64: 16, 72>}, {pipeline_mode = #tpu.pipeline_mode<synchronous>, transform_indices = @transform_2, window_bounds = array<i64: 16, 1>}, {pipeline_mode = #tpu.pipeline_mode<synchronous>, transform_indices = @transform_3, window_bounds = array<i64: 16, 144>}, {pipeline_mode = #tpu.pipeline_mode<synchronous>, transform_indices = @transform_4, window_bounds = array<i64: 16, 1>}, {pipeline_mode = #tpu.pipeline_mode<synchronous>, transform_indices = @transform_5, window_bounds = array<i64: 512, 128>}, {pipeline_mode = #tpu.pipeline_mode<synchronous>, transform_indices = @transform_6, window_bounds = array<i64: 16, 512>}, {pipeline_mode = #tpu.pipeline_mode<synchronous>, transform_indices = @transform_7, window_bounds = array<i64: 16, 128>}]} {
    %0 = tpu.iota {dimensions = array<i32: 1>} : vector<1x512xi32>
    %c255_i32 = arith.constant 255 : i32
    %1 = vector.broadcast %c255_i32 : i32 to vector<1x512xi32>
    %2 = arith.andi %0, %1 : vector<1x512xi32>
    %c4_i32 = arith.constant 4 : i32
    %3 = vector.broadcast %c4_i32 : i32 to vector<1x512xi32>
    %4 = arith.shrsi %2, %3 : vector<1x512xi32>
    %c15_i32 = arith.constant 15 : i32
    %5 = vector.broadcast %c15_i32 : i32 to vector<1x512xi32>
    %6 = arith.andi %2, %5 : vector<1x512xi32>
    %c1_i32 = arith.constant 1 : i32
    %7 = vector.broadcast %c1_i32 : i32 to vector<1x512xi32>
    %8 = arith.cmpi sge, %4, %7 : vector<1x512xi32>
    %c1_i32_0 = arith.constant 1 : i32
    %9 = vector.broadcast %c1_i32_0 : i32 to vector<1x512xi32>
    %10 = arith.cmpi sge, %6, %9 : vector<1x512xi32>
    %11 = arith.andi %8, %10 : vector<1x512xi1>
    %c1_i32_1 = arith.constant 1 : i32
    %12 = vector.broadcast %c1_i32_1 : i32 to vector<1x512xi32>
    %13 = arith.cmpi sge, %4, %12 : vector<1x512xi32>
    %c1_i32_2 = arith.constant 1 : i32
    %14 = vector.broadcast %c1_i32_2 : i32 to vector<1x512xi32>
    %15 = arith.cmpi sge, %4, %14 : vector<1x512xi32>
    %c15_i32_3 = arith.constant 15 : i32
    %16 = vector.broadcast %c15_i32_3 : i32 to vector<1x512xi32>
    %17 = arith.cmpi slt, %6, %16 : vector<1x512xi32>
    %18 = arith.andi %15, %17 : vector<1x512xi1>
    %c1_i32_4 = arith.constant 1 : i32
    %19 = vector.broadcast %c1_i32_4 : i32 to vector<1x512xi32>
    %20 = arith.cmpi sge, %6, %19 : vector<1x512xi32>
    %c15_i32_5 = arith.constant 15 : i32
    %21 = vector.broadcast %c15_i32_5 : i32 to vector<1x512xi32>
    %22 = arith.cmpi slt, %6, %21 : vector<1x512xi32>
    %c15_i32_6 = arith.constant 15 : i32
    %23 = vector.broadcast %c15_i32_6 : i32 to vector<1x512xi32>
    %24 = arith.cmpi slt, %4, %23 : vector<1x512xi32>
    %c1_i32_7 = arith.constant 1 : i32
    %25 = vector.broadcast %c1_i32_7 : i32 to vector<1x512xi32>
    %26 = arith.cmpi sge, %6, %25 : vector<1x512xi32>
    %27 = arith.andi %24, %26 : vector<1x512xi1>
    %c15_i32_8 = arith.constant 15 : i32
    %28 = vector.broadcast %c15_i32_8 : i32 to vector<1x512xi32>
    %29 = arith.cmpi slt, %4, %28 : vector<1x512xi32>
    %c15_i32_9 = arith.constant 15 : i32
    %30 = vector.broadcast %c15_i32_9 : i32 to vector<1x512xi32>
    %31 = arith.cmpi slt, %4, %30 : vector<1x512xi32>
    %c15_i32_10 = arith.constant 15 : i32
    %32 = vector.broadcast %c15_i32_10 : i32 to vector<1x512xi32>
    %33 = arith.cmpi slt, %6, %32 : vector<1x512xi32>
    %34 = arith.andi %31, %33 : vector<1x512xi1>
    %c0 = arith.constant 0 : index
    %c0_11 = arith.constant 0 : index
    %35 = vector.load %arg1[%c0, %c0_11] : memref<8x512xf32, #tpu.memory_space<vmem>>, vector<8x512xf32>
    %c0_12 = arith.constant 0 : index
    %c0_13 = arith.constant 0 : index
    %36 = vector.load %arg2[%c0_12, %c0_13] : memref<16x72xf32, #tpu.memory_space<vmem>>, vector<16x72xf32>
    %c0_14 = arith.constant 0 : index
    %c0_15 = arith.constant 0 : index
    %37 = vector.load %arg3[%c0_14, %c0_15] : memref<16x1xf32, #tpu.memory_space<vmem>>, vector<16x1xf32>
    %c17_i32 = arith.constant 17 : i32
    %38 = tpu.dynamic_rotate %35 by %c17_i32 dim 1 : vector<8x512xf32>, i32 -> vector<8x512xf32>
    %cst = arith.constant 0.000000e+00 : f32
    %39 = vector.shape_cast %11 : vector<1x512xi1> to vector<1x512xi1>
    %40 = vector.broadcast %39 : vector<1x512xi1> to vector<8x512xi1>
    %41 = vector.broadcast %cst : f32 to vector<8x512xf32>
    %42 = arith.select %40, %38, %41 : vector<8x512xi1>, vector<8x512xf32>
    %c16_i32 = arith.constant 16 : i32
    %43 = tpu.dynamic_rotate %35 by %c16_i32 dim 1 : vector<8x512xf32>, i32 -> vector<8x512xf32>
    %cst_16 = arith.constant 0.000000e+00 : f32
    %44 = vector.shape_cast %13 : vector<1x512xi1> to vector<1x512xi1>
    %45 = vector.broadcast %44 : vector<1x512xi1> to vector<8x512xi1>
    %46 = vector.broadcast %cst_16 : f32 to vector<8x512xf32>
    %47 = arith.select %45, %43, %46 : vector<8x512xi1>, vector<8x512xf32>
    %c15_i32_17 = arith.constant 15 : i32
    %48 = tpu.dynamic_rotate %35 by %c15_i32_17 dim 1 : vector<8x512xf32>, i32 -> vector<8x512xf32>
    %cst_18 = arith.constant 0.000000e+00 : f32
    %49 = vector.shape_cast %18 : vector<1x512xi1> to vector<1x512xi1>
    %50 = vector.broadcast %49 : vector<1x512xi1> to vector<8x512xi1>
    %51 = vector.broadcast %cst_18 : f32 to vector<8x512xf32>
    %52 = arith.select %50, %48, %51 : vector<8x512xi1>, vector<8x512xf32>
    %c1_i32_19 = arith.constant 1 : i32
    %53 = tpu.dynamic_rotate %35 by %c1_i32_19 dim 1 : vector<8x512xf32>, i32 -> vector<8x512xf32>
    %cst_20 = arith.constant 0.000000e+00 : f32
    %54 = vector.shape_cast %20 : vector<1x512xi1> to vector<1x512xi1>
    %55 = vector.broadcast %54 : vector<1x512xi1> to vector<8x512xi1>
    %56 = vector.broadcast %cst_20 : f32 to vector<8x512xf32>
    %57 = arith.select %55, %53, %56 : vector<8x512xi1>, vector<8x512xf32>
    %c511_i32 = arith.constant 511 : i32
    %58 = tpu.dynamic_rotate %35 by %c511_i32 dim 1 : vector<8x512xf32>, i32 -> vector<8x512xf32>
    %cst_21 = arith.constant 0.000000e+00 : f32
    %59 = vector.shape_cast %22 : vector<1x512xi1> to vector<1x512xi1>
    %60 = vector.broadcast %59 : vector<1x512xi1> to vector<8x512xi1>
    %61 = vector.broadcast %cst_21 : f32 to vector<8x512xf32>
    %62 = arith.select %60, %58, %61 : vector<8x512xi1>, vector<8x512xf32>
    %c497_i32 = arith.constant 497 : i32
    %63 = tpu.dynamic_rotate %35 by %c497_i32 dim 1 : vector<8x512xf32>, i32 -> vector<8x512xf32>
    %cst_22 = arith.constant 0.000000e+00 : f32
    %64 = vector.shape_cast %27 : vector<1x512xi1> to vector<1x512xi1>
    %65 = vector.broadcast %64 : vector<1x512xi1> to vector<8x512xi1>
    %66 = vector.broadcast %cst_22 : f32 to vector<8x512xf32>
    %67 = arith.select %65, %63, %66 : vector<8x512xi1>, vector<8x512xf32>
    %c496_i32 = arith.constant 496 : i32
    %68 = tpu.dynamic_rotate %35 by %c496_i32 dim 1 : vector<8x512xf32>, i32 -> vector<8x512xf32>
    %cst_23 = arith.constant 0.000000e+00 : f32
    %69 = vector.shape_cast %29 : vector<1x512xi1> to vector<1x512xi1>
    %70 = vector.broadcast %69 : vector<1x512xi1> to vector<8x512xi1>
    %71 = vector.broadcast %cst_23 : f32 to vector<8x512xf32>
    %72 = arith.select %70, %68, %71 : vector<8x512xi1>, vector<8x512xf32>
    %c495_i32 = arith.constant 495 : i32
    %73 = tpu.dynamic_rotate %35 by %c495_i32 dim 1 : vector<8x512xf32>, i32 -> vector<8x512xf32>
    %cst_24 = arith.constant 0.000000e+00 : f32
    %74 = vector.shape_cast %34 : vector<1x512xi1> to vector<1x512xi1>
    %75 = vector.broadcast %74 : vector<1x512xi1> to vector<8x512xi1>
    %76 = vector.broadcast %cst_24 : f32 to vector<8x512xf32>
    %77 = arith.select %75, %73, %76 : vector<8x512xi1>, vector<8x512xf32>
    %78 = tpu.concatenate %42, %47, %52, %57, %35, %62, %67, %72, %77 in 0 : vector<8x512xf32>, vector<8x512xf32>, vector<8x512xf32>, vector<8x512xf32>, vector<8x512xf32>, vector<8x512xf32>, vector<8x512xf32>, vector<8x512xf32>, vector<8x512xf32> -> vector<72x512xf32>
    %cst_25 = arith.constant dense<0.000000e+00> : vector<16x512xf32>
    %79 = tpu.matmul %36, %78, %cst_25 {dimension_numbers = #tpu.dot_dimension_numbers<[1], [0], [0], [1], [0, 0, 1, 1], [], []>} : vector<16x72xf32>, vector<72x512xf32>, vector<16x512xf32> -> vector<16x512xf32>
    %80 = vector.broadcast %37 : vector<16x1xf32> to vector<16x512xf32>
    %81 = arith.addf %79, %80 : vector<16x512xf32>
    %cst_26 = arith.constant 0.000000e+00 : f32
    %82 = vector.broadcast %cst_26 : f32 to vector<16x512xf32>
    %83 = arith.maximumf %81, %82 : vector<16x512xf32>
    %c0_27 = arith.constant 0 : index
    %c0_28 = arith.constant 0 : index
    %84 = vector.load %arg4[%c0_27, %c0_28] : memref<16x144xf32, #tpu.memory_space<vmem>>, vector<16x144xf32>
    %c0_29 = arith.constant 0 : index
    %c0_30 = arith.constant 0 : index
    %85 = vector.load %arg5[%c0_29, %c0_30] : memref<16x1xf32, #tpu.memory_space<vmem>>, vector<16x1xf32>
    %c17_i32_31 = arith.constant 17 : i32
    %86 = tpu.dynamic_rotate %83 by %c17_i32_31 dim 1 : vector<16x512xf32>, i32 -> vector<16x512xf32>
    %cst_32 = arith.constant 0.000000e+00 : f32
    %87 = vector.shape_cast %11 : vector<1x512xi1> to vector<1x512xi1>
    %88 = vector.broadcast %87 : vector<1x512xi1> to vector<16x512xi1>
    %89 = vector.broadcast %cst_32 : f32 to vector<16x512xf32>
    %90 = arith.select %88, %86, %89 : vector<16x512xi1>, vector<16x512xf32>
    %c16_i32_33 = arith.constant 16 : i32
    %91 = tpu.dynamic_rotate %83 by %c16_i32_33 dim 1 : vector<16x512xf32>, i32 -> vector<16x512xf32>
    %cst_34 = arith.constant 0.000000e+00 : f32
    %92 = vector.shape_cast %13 : vector<1x512xi1> to vector<1x512xi1>
    %93 = vector.broadcast %92 : vector<1x512xi1> to vector<16x512xi1>
    %94 = vector.broadcast %cst_34 : f32 to vector<16x512xf32>
    %95 = arith.select %93, %91, %94 : vector<16x512xi1>, vector<16x512xf32>
    %c15_i32_35 = arith.constant 15 : i32
    %96 = tpu.dynamic_rotate %83 by %c15_i32_35 dim 1 : vector<16x512xf32>, i32 -> vector<16x512xf32>
    %cst_36 = arith.constant 0.000000e+00 : f32
    %97 = vector.shape_cast %18 : vector<1x512xi1> to vector<1x512xi1>
    %98 = vector.broadcast %97 : vector<1x512xi1> to vector<16x512xi1>
    %99 = vector.broadcast %cst_36 : f32 to vector<16x512xf32>
    %100 = arith.select %98, %96, %99 : vector<16x512xi1>, vector<16x512xf32>
    %c1_i32_37 = arith.constant 1 : i32
    %101 = tpu.dynamic_rotate %83 by %c1_i32_37 dim 1 : vector<16x512xf32>, i32 -> vector<16x512xf32>
    %cst_38 = arith.constant 0.000000e+00 : f32
    %102 = vector.shape_cast %20 : vector<1x512xi1> to vector<1x512xi1>
    %103 = vector.broadcast %102 : vector<1x512xi1> to vector<16x512xi1>
    %104 = vector.broadcast %cst_38 : f32 to vector<16x512xf32>
    %105 = arith.select %103, %101, %104 : vector<16x512xi1>, vector<16x512xf32>
    %c511_i32_39 = arith.constant 511 : i32
    %106 = tpu.dynamic_rotate %83 by %c511_i32_39 dim 1 : vector<16x512xf32>, i32 -> vector<16x512xf32>
    %cst_40 = arith.constant 0.000000e+00 : f32
    %107 = vector.shape_cast %22 : vector<1x512xi1> to vector<1x512xi1>
    %108 = vector.broadcast %107 : vector<1x512xi1> to vector<16x512xi1>
    %109 = vector.broadcast %cst_40 : f32 to vector<16x512xf32>
    %110 = arith.select %108, %106, %109 : vector<16x512xi1>, vector<16x512xf32>
    %c497_i32_41 = arith.constant 497 : i32
    %111 = tpu.dynamic_rotate %83 by %c497_i32_41 dim 1 : vector<16x512xf32>, i32 -> vector<16x512xf32>
    %cst_42 = arith.constant 0.000000e+00 : f32
    %112 = vector.shape_cast %27 : vector<1x512xi1> to vector<1x512xi1>
    %113 = vector.broadcast %112 : vector<1x512xi1> to vector<16x512xi1>
    %114 = vector.broadcast %cst_42 : f32 to vector<16x512xf32>
    %115 = arith.select %113, %111, %114 : vector<16x512xi1>, vector<16x512xf32>
    %c496_i32_43 = arith.constant 496 : i32
    %116 = tpu.dynamic_rotate %83 by %c496_i32_43 dim 1 : vector<16x512xf32>, i32 -> vector<16x512xf32>
    %cst_44 = arith.constant 0.000000e+00 : f32
    %117 = vector.shape_cast %29 : vector<1x512xi1> to vector<1x512xi1>
    %118 = vector.broadcast %117 : vector<1x512xi1> to vector<16x512xi1>
    %119 = vector.broadcast %cst_44 : f32 to vector<16x512xf32>
    %120 = arith.select %118, %116, %119 : vector<16x512xi1>, vector<16x512xf32>
    %c495_i32_45 = arith.constant 495 : i32
    %121 = tpu.dynamic_rotate %83 by %c495_i32_45 dim 1 : vector<16x512xf32>, i32 -> vector<16x512xf32>
    %cst_46 = arith.constant 0.000000e+00 : f32
    %122 = vector.shape_cast %34 : vector<1x512xi1> to vector<1x512xi1>
    %123 = vector.broadcast %122 : vector<1x512xi1> to vector<16x512xi1>
    %124 = vector.broadcast %cst_46 : f32 to vector<16x512xf32>
    %125 = arith.select %123, %121, %124 : vector<16x512xi1>, vector<16x512xf32>
    %126 = tpu.concatenate %90, %95, %100, %105, %83, %110, %115, %120, %125 in 0 : vector<16x512xf32>, vector<16x512xf32>, vector<16x512xf32>, vector<16x512xf32>, vector<16x512xf32>, vector<16x512xf32>, vector<16x512xf32>, vector<16x512xf32>, vector<16x512xf32> -> vector<144x512xf32>
    %cst_47 = arith.constant dense<0.000000e+00> : vector<16x512xf32>
    %127 = tpu.matmul %84, %126, %cst_47 {dimension_numbers = #tpu.dot_dimension_numbers<[1], [0], [0], [1], [0, 0, 1, 1], [], []>} : vector<16x144xf32>, vector<144x512xf32>, vector<16x512xf32> -> vector<16x512xf32>
    %128 = vector.broadcast %85 : vector<16x1xf32> to vector<16x512xf32>
    %129 = arith.addf %127, %128 : vector<16x512xf32>
    %cst_48 = arith.constant 0.000000e+00 : f32
    %130 = vector.broadcast %cst_48 : f32 to vector<16x512xf32>
    %131 = arith.maximumf %129, %130 : vector<16x512xf32>
    %c0_49 = arith.constant 0 : index
    %c0_50 = arith.constant 0 : index
    %132 = vector.load %arg7[%c0_49, %c0_50] : memref<16x512xf32, #tpu.memory_space<vmem>>, vector<16x512xf32>
    tpu.vector_store %arg7[%c0_49, %c0_50], %131 {strides = array<i32>} : memref<16x512xf32, #tpu.memory_space<vmem>>, vector<16x512xf32>,
    %c511_i32_51 = arith.constant 511 : i32
    %133 = tpu.dynamic_rotate %131 by %c511_i32_51 dim 1 : vector<16x512xf32>, i32 -> vector<16x512xf32>
    %134 = arith.maximumf %131, %133 : vector<16x512xf32>
    %c496_i32_52 = arith.constant 496 : i32
    %135 = tpu.dynamic_rotate %131 by %c496_i32_52 dim 1 : vector<16x512xf32>, i32 -> vector<16x512xf32>
    %c495_i32_53 = arith.constant 495 : i32
    %136 = tpu.dynamic_rotate %131 by %c495_i32_53 dim 1 : vector<16x512xf32>, i32 -> vector<16x512xf32>
    %137 = arith.maximumf %135, %136 : vector<16x512xf32>
    %138 = arith.maximumf %134, %137 : vector<16x512xf32>
    %c0_54 = arith.constant 0 : index
    %c0_55 = arith.constant 0 : index
    %139 = vector.load %arg6[%c0_54, %c0_55] : memref<512x128xf32, #tpu.memory_space<vmem>>, vector<512x128xf32>
    %cst_56 = arith.constant dense<0.000000e+00> : vector<16x128xf32>
    %140 = tpu.matmul %138, %139, %cst_56 {dimension_numbers = #tpu.dot_dimension_numbers<[1], [0], [0], [1], [0, 0, 1, 1], [], []>} : vector<16x512xf32>, vector<512x128xf32>, vector<16x128xf32> -> vector<16x128xf32>
    %c0_57 = arith.constant 0 : index
    %c0_58 = arith.constant 0 : index
    %141 = vector.load %arg8[%c0_57, %c0_58] : memref<16x128xf32, #tpu.memory_space<vmem>>, vector<16x128xf32>
    tpu.vector_store %arg8[%c0_57, %c0_58], %140 {strides = array<i32>} : memref<16x128xf32, #tpu.memory_space<vmem>>, vector<16x128xf32>,
    return
  }
  func.func @transform_0(%arg0: i32) -> (i32, i32) {
    %c0_i32 = arith.constant 0 : i32
    %c0_i32_0 = arith.constant 0 : i32
    %c0_i32_1 = arith.constant 0 : i32
    return %c0_i32, %c0_i32_0 : i32, i32
  }
  func.func @transform_1(%arg0: i32) -> (i32, i32) {
    %c0_i32 = arith.constant 0 : i32
    %c0_i32_0 = arith.constant 0 : i32
    %c0_i32_1 = arith.constant 0 : i32
    return %c0_i32, %c0_i32_0 : i32, i32
  }
  func.func @transform_2(%arg0: i32) -> (i32, i32) {
    %c0_i32 = arith.constant 0 : i32
    %c0_i32_0 = arith.constant 0 : i32
    %c0_i32_1 = arith.constant 0 : i32
    return %c0_i32, %c0_i32_0 : i32, i32
  }
  func.func @transform_3(%arg0: i32) -> (i32, i32) {
    %c0_i32 = arith.constant 0 : i32
    %c0_i32_0 = arith.constant 0 : i32
    %c0_i32_1 = arith.constant 0 : i32
    return %c0_i32, %c0_i32_0 : i32, i32
  }
  func.func @transform_4(%arg0: i32) -> (i32, i32) {
    %c0_i32 = arith.constant 0 : i32
    %c0_i32_0 = arith.constant 0 : i32
    %c0_i32_1 = arith.constant 0 : i32
    return %c0_i32, %c0_i32_0 : i32, i32
  }
  func.func @transform_5(%arg0: i32) -> (i32, i32) {
    %c0_i32 = arith.constant 0 : i32
    %c0_i32_0 = arith.constant 0 : i32
    %c0_i32_1 = arith.constant 0 : i32
    return %c0_i32, %c0_i32_0 : i32, i32
  }
  func.func @transform_6(%arg0: i32) -> (i32, i32) {
    %c0_i32 = arith.constant 0 : i32
    %c0_i32_0 = arith.constant 0 : i32
    %c0_i32_1 = arith.constant 0 : i32
    return %c0_i32, %c0_i32_0 : i32, i32
  }
  func.func @transform_7(%arg0: i32) -> (i32, i32) {
    %c0_i32 = arith.constant 0 : i32
    %c0_i32_0 = arith.constant 0 : i32
    %c0_i32_1 = arith.constant 0 : i32
    return %c0_i32, %c0_i32_0 : i32, i32
  }
}

</mosaic_0001>

<bundles_post_ra>
// kernel: encoder_block.1
= control target key start
LH: loop header
LB: loop body
LE: loop exit
PB: predicated region body
PF: predicated region fallthrough
CT: control target
= control target key end

     0   :  { %s1929_s9 = smov 16   ;;  %s1930_s10 = smov 17   ;;  %v1935_v6 = vmov 0.0   ;;  %v1937_v7 = vmov 0   ;;  %v25_v10 = vlaneseq  ;;  %v3112_v52 = vmov 0  ;;  %s3062_s0 = inlined_call_operand.vmem [shape: f32[8,512], index: 0, kind: input, shape index: {}]   ;;  %s3063_s2 = inlined_call_operand.vmem [shape: f32[16,1], index: 2, kind: input, shape index: {}]   ;;  %s3064_s1 = inlined_call_operand.vmem [shape: f32[16,72], index: 1, kind: input, shape index: {}]   ;;  %s3065_s3 = inlined_call_operand.vmem [shape: f32[16,144], index: 3, kind: input, shape index: {}]   ;;  %s3066_s4 = inlined_call_operand.vmem [shape: f32[16,1], index: 4, kind: input, shape index: {}]   ;;  %s3067_s5 = inlined_call_operand.vmem [shape: f32[512,128], index: 5, kind: input, shape index: {}]   ;;  %s3068_s6 = inlined_call_operand.vmem [shape: f32[16,512], index: 6, kind: output, shape index: {0}]   ;;  %s3069_s7 = inlined_call_operand.vmem [shape: f32[16,128], index: 7, kind: output, shape index: {1}]  }
   0x1   :  { %v1983_v0 = vld [vmem:[%s3062_s0] sm:$0xff]  ;;  %v1988_v1 = vld [vmem:[%s3062_s0 + $0x8] sm:$0xff]  ;;  %v1993_v2 = vld [vmem:[%s3062_s0 + $0x10] sm:$0xff]  ;;  %s1931_s11 = smov 15   ;;  %s1933_s12 = smov 127   ;;  %363 = vmatprep.mubr.f32.mxu0 %v1935_v6  ;;  %440 = vmatprep.mubr.f32.mxu1 %v1935_v6 }
   0x2   :  { %v1647_v3 = vpack.i.bf16 %v1988_v1, %v1983_v0  ;;  %v2000_v4 = vld [vmem:[%s3062_s0 + $0x18] sm:$0xff]  ;;  %s1932_s0 = smov 1   ;;  %s1934_s13 = smov 113   ;;  %1707 = vset.pattern.permute.xlu0 %v1937_v7  ;;  %1708 = vset.pattern.permute.xlu1 %v1937_v7  ;;  %v80_v8 = vld [vmem:[%s3063_s2] sm:$0xff]  ;;  %v81_v9 = vld [vmem:[%s3063_s2 + $0x8] sm:$0xff]  ;;  %v2034_v11 = vand.u32 127, %v25_v10 }
   0x3   :  { %v1652_v5 = vpack.i.bf16 %v2000_v4, %v1993_v2  ;;  %s1936_s14 = smov 112   ;;  %s1938_s15 = smov 111  }
   0x4   :  { %1648 = vrot.lane.b32.xlu1 %v1647_v3, %s1929_s9  ;;  %1638 = vrot.lane.b32.xlu0 %v1647_v3, %s1930_s10  ;;  %v27_v12 = vadd.s32 128, %v2034_v11  ;;  %v29_v13 = vadd.s32 384, %v2034_v11  ;;  %v30_v15 = vand.u32 255, %v2034_v11  ;;  %v28_v17 = vadd.s32 256, %v2034_v11 }
   0x5   :  { %vm3077_vm7 = vcmp.lt.s32.totalorder %v2034_v11, 17  ;;  %vm3076_vm8 = vcmp.lt.s32.totalorder %v2034_v11, 16 }
   0x6   :  { %v31_v14 = vand.u32 255, %v27_v12  ;;  %v33_v16 = vand.u32 255, %v29_v13  ;;  %v2044_v20 = vshra.s32 %v30_v15, 4  ;;  %v2046_v21 = vand.u32 15, %v30_v15 }
   0x7   :  { %v32_v24 = vand.u32 255, %v28_v17  ;;  %v3122_v15 = vmov 0 }
   0x8   :  { %1653 = vrot.lane.b32.xlu1 %v1652_v5, %s1929_s9  ;;  %1643 = vrot.lane.b32.xlu0 %v1652_v5, %s1930_s10  ;;  %v2040_v18 = vshra.s32 %v31_v14, 4  ;;  %v2042_v19 = vand.u32 15, %v31_v14  ;;  %v2048_v22 = vshra.s32 %v33_v16, 4  ;;  %v2050_v23 = vand.u32 15, %v33_v16 }
   0x9   :  { %vm3072_vm2 = vcmp.ge.s32.totalorder %v2044_v20, 1  ;;  %vm3070_vm3 = vcmp.ge.s32.totalorder %v2046_v21, 1  ;;  %v2058_v25 = vshra.s32 %v32_v24, 4  ;;  %v2060_v26 = vand.u32 15, %v32_v24 }
   0xa   :  { %vm3074_vm0 = vcmp.ge.s32.totalorder %v2040_v18, 1  ;;  %vm3079_vm1 = vcmp.ge.s32.totalorder %v2042_v19, 1  ;;  %vm3080_vm4 = vcmp.ge.s32.totalorder %v2048_v22, 1  ;;  %vm3071_vm5 = vcmp.ge.s32.totalorder %v2050_v23, 1  ;;  %vm2076_vm9 = vmand %vm3072_vm2, %vm3070_vm3 }
   0xb   :  { %vm2066_vm6 = vmand %vm3074_vm0, %vm3079_vm1  ;;  %vm3078_vm12 = vcmp.ge.s32.totalorder %v2058_v25, 1  ;;  %vm3073_vm13 = vcmp.ge.s32.totalorder %v2060_v26, 1  ;;  %vm3075_vm15 = vcmp.lt.s32.totalorder %v2042_v19, 15 }
   0xc   :  { %1663 = vrot.lane.b32.xlu1 %v1652_v5, %s1931_s11  ;;  %1658 = vrot.lane.b32.xlu0 %v1647_v3, %s1931_s11  ;;  %vm2084_vm10 = vmand %vm3080_vm4, %vm3071_vm5 }
   0xd   :  { %vm1411_vm11 = vmpackc.low %vm3074_vm0, %vm2066_vm6 }
   0xe   :  { %vm2102_vm14 = vmpackc.low %vm3072_vm2, %vm2076_vm9  ;;  %vm3081_vm2 = vcmp.lt.s32.totalorder %v2050_v23, 15 }
   0xf   :  { %vm2111_vm3 = vmpackc.low %vm3080_vm4, %vm2084_vm10 }
  0x10   :  { %1673 = vrot.lane.b32.xlu1 %v1652_v5, %s1932_s0  ;;  %1668 = vrot.lane.b32.xlu0 %v1647_v3, %s1932_s0  ;;  %vm2119_vm5 = vmand %vm3078_vm12, %vm3073_vm13 }
  0x11   :  { %vm1438_vm13 = vmpackc.low %vm3078_vm12, %vm2119_vm5 }
  0x12   :  { %vm2167_vm12 = vmand %vm3080_vm4, %vm3081_vm2 }
  0x14   :  { %1683 = vrot.lane.b32.xlu1 %v1652_v5, %s1933_s12  ;;  %1678 = vrot.lane.b32.xlu0 %v1647_v3, %s1933_s12 }
  0x18   :  { %1693 = vrot.lane.b32.xlu1 %v1652_v5, %s1934_s13  ;;  %1688 = vrot.lane.b32.xlu0 %v1647_v3, %s1934_s13 }
  0x1c   :  { %1703 = vrot.lane.b32.xlu1 %v1652_v5, %s1936_s14  ;;  %1698 = vrot.lane.b32.xlu0 %v1647_v3, %s1936_s14  ;;  %v3116_v5 = vmov 0  ;;  %v3163_v3 = vmov 0 }
  0x1d   :  { %v3117_v5 = vsel %vm2167_vm12, 4294967295, %v3116_v5 }
  0x20   :  { %259 = vrot.lane.b32.xlu1 %v1988_v1, %s1938_s15  ;;  %257 = vrot.lane.b32.xlu0 %v1983_v0, %s1938_s15 }
  0x24   :  { %263 = vrot.lane.b32.xlu1 %v2000_v4, %s1938_s15  ;;  %261 = vrot.lane.b32.xlu0 %v1993_v2, %s1938_s15 }
  0x28   :  { %284 = vperm.xlu0 %1707, %v80_v8   ;;  %289 = vperm.xlu1 %1708, %v81_v9   ;;  %v3119_v9 = vmov 0 }
  0x76   :  { %v1649_v27 = vpop.permute.xlu1 %1648  ;;  %v1639_v28 = vpop.permute.xlu0 %1638 }
  0x77   :  { %v1651_v30 = vunpack.i.h.bf16 %v1649_v27  ;;  %v1650_v31 = vunpack.i.l.bf16 %v1649_v27  ;;  %v1641_v32 = vunpack.i.h.bf16 %v1639_v28  ;;  %v1640_v33 = vunpack.i.l.bf16 %v1639_v28 }
  0x79   :  { %v93_v36 = vsel %vm3077_vm7, %v1640_v33, %v1641_v32  ;;  %v118_v37 = vsel %vm3076_vm8, %v1650_v31, %v1651_v30 }
  0x7a   :  { %v1654_v38 = vpop.permute.xlu1 %1653  ;;  %v1644_v39 = vpop.permute.xlu0 %1643  ;;  %v1410_v40 = vpack.c.bf16 %v118_v37, %v93_v36 }
  0x7b   :  { %v1656_v42 = vunpack.i.h.bf16 %v1654_v38  ;;  %v1655_v43 = vunpack.i.l.bf16 %v1654_v38  ;;  %v1646_v44 = vunpack.i.h.bf16 %v1644_v39  ;;  %v1645_v45 = vunpack.i.l.bf16 %v1644_v39 }
  0x7c   :  { %1412 = vmatprep.subr.msk.bf16.mxu0 %vm1411_vm11, %v1410_v40  ;;  %vm2136_vm11 = vmand %vm3074_vm0, %vm3075_vm15  ;;  %vm3082_vm0 = vcmp.lt.s32.totalorder %v2046_v21, 15  ;;  %vm3083_vm15 = vcmp.lt.s32.totalorder %v2060_v26, 15 }
  0x7d   :  { %v94_v48 = vsel %vm3077_vm7, %v1646_v44, %v1640_v33  ;;  %v119_v49 = vsel %vm3076_vm8, %v1656_v42, %v1650_v31  ;;  %v91_v50 = vsel %vm3077_vm7, %v1645_v45, %v1646_v44  ;;  %v116_v51 = vsel %vm3076_vm8, %v1655_v43, %v1656_v42 }
  0x7e   :  { %v3113_v52 = vsel %vm2136_vm11, 4294967295, %v3112_v52  ;;  %v1664_v53 = vpop.permute.xlu1 %1663  ;;  %v1659_v54 = vpop.permute.xlu0 %1658  ;;  %v1413_v55 = vpack.c.bf16 %v119_v49, %v94_v48  ;;  %v1434_v56 = vpack.c.bf16 %v116_v51, %v91_v50  ;;  %v92_v57 = vsel %vm3077_vm7, %v1641_v32, %v1645_v45  ;;  %v1022_v49 = vld [vmem:[%s3067_s5 + $0x80] sm:$0xff] }
  0x7f   :  { %v117_v58 = vsel %vm3076_vm8, %v1651_v30, %v1655_v43  ;;  %v1666_v59 = vunpack.i.h.bf16 %v1664_v53  ;;  %v1665_v60 = vunpack.i.l.bf16 %v1664_v53  ;;  %v1661_v61 = vunpack.i.h.bf16 %v1659_v54  ;;  %vm2158_vm8 = vmpackc.low %vm3079_vm1, %vm2136_vm11 }
  0x80   :  { %v1660_v62 = vunpack.i.l.bf16 %v1659_v54  ;;  %1415 = vmatpush1.bf16.msk.msra.mxu0 %vm2102_vm14, %v1413_v55  ;;  %1436 = vmatprep.subr.msk.bf16.mxu1 %vm2111_vm3, %v1434_v56  ;;  %v1437_v63 = vpack.c.bf16 %v117_v58, %v92_v57  ;;  %vm3118_vm1 = vcmp.ge.s32.totalorder %v2044_v20, 1  ;;  %vm3124_vm14 = vcmp.lt.s32.totalorder %v2034_v11, 15 }
  0x81   :  { %vm2177_vm7 = vmand %vm3118_vm1, %vm3082_vm0  ;;  %v141_v16 = vsel %vm3124_vm14, %v1665_v60, %v1666_v59  ;;  %vm3128_vm3 = vcmp.ge.s32.totalorder %v2050_v23, 1  ;;  %v3153_v56 = vmov 0 }
  0x82   :  { %1439 = vmatpush1.bf16.msk.msra.mxu1 %vm1438_vm13, %v1437_v63  ;;  %v1674_v7 = vpop.permute.xlu1 %1673  ;;  %v1669_v8 = vpop.permute.xlu0 %1668  ;;  %v3120_v9 = vsel %vm2177_vm7, 4294967295, %v3119_v9  ;;  %vm3121_vm13 = vcmp.ge.s32.totalorder %v2058_v25, 1  ;;  %vm3125_vm1 = vmmov %vm3124_vm14 }
  0x83   :  { %v1676_v10 = vunpack.i.h.bf16 %v1674_v7  ;;  %v1675_v12 = vunpack.i.l.bf16 %v1674_v7  ;;  %v1671_v13 = vunpack.i.h.bf16 %v1669_v8  ;;  %v1670_v14 = vunpack.i.l.bf16 %v1669_v8  ;;  %vm2186_vm2 = vmand %vm3121_vm13, %vm3083_vm15 }
  0x84   :  { %v3123_v15 = vsel %vm2186_vm2, 4294967295, %v3122_v15  ;;  %v142_v17 = vsel %vm3125_vm1, %v1661_v61, %v1665_v60  ;;  %vm3126_vm0 = vmmov %vm3125_vm1  ;;  %vm3131_vm15 = vcmp.lt.s32.totalorder %v2034_v11, 1 }
  0x85   :  { %v143_v24 = vsel %vm3126_vm0, %v1660_v62, %v1661_v61  ;;  %vm3127_vm4 = vmmov %vm3126_vm0  ;;  %v166_v30 = vsel %vm3131_vm15, %v1675_v12, %v1676_v10 }
  0x86   :  { %v144_v27 = vsel %vm3127_vm4, %v1666_v59, %v1660_v62  ;;  %vm2202_vm13 = vmpackc.low %vm3128_vm3, %vm2167_vm12  ;;  %vm3135_vm4 = vcmp.ge.s32.totalorder %v2046_v21, 1  ;;  %v1440_v37 = vpack.c.bf16 %v166_v30, %v141_v16  ;;  %v1684_v41 = vpop.permute.xlu1 %1683  ;;  %v1679_v42 = vpop.permute.xlu0 %1678 }
  0x87   :  { %vm3132_vm14 = vmmov %vm3131_vm15  ;;  %vm3138_vm15 = vcmp.ge.s32.totalorder %v2060_v26, 1  ;;  %v1686_v44 = vunpack.i.h.bf16 %v1684_v41  ;;  %v1685_v45 = vunpack.i.l.bf16 %v1684_v41  ;;  %v1681_v46 = vunpack.i.h.bf16 %v1679_v42 }
  0x88   :  { %v167_v31 = vsel %vm3132_vm14, %v1671_v13, %v1675_v12  ;;  %vm3133_vm1 = vmmov %vm3132_vm14  ;;  %v1680_v48 = vunpack.i.l.bf16 %v1679_v42  ;;  %1442 = vmatprep.subr.msk.bf16.mxu1 %vm2202_vm13, %v1440_v37 }
  0x89   :  { %v168_v32 = vsel %vm3133_vm1, %v1670_v14, %v1671_v13  ;;  %vm3134_vm0 = vmmov %vm3133_vm1  ;;  %v1443_v40 = vpack.c.bf16 %v167_v31, %v142_v17  ;;  %vm3088_vm1 = vmmov 1   ;;  %v3171_v17 = vmov 0 }
  0x8a   :  { %v169_v33 = vsel %vm3134_vm0, %v1676_v10, %v1670_v14  ;;  %vm2218_vm3 = vmpackc.low %vm3135_vm4, %vm2177_vm7  ;;  %v1416_v38 = vpack.c.bf16 %v168_v32, %v143_v24  ;;  %vm3141_vm0 = vcmp.lt.s32.totalorder %v2042_v19, 15  ;;  %v1694_v61 = vpop.permute.xlu1 %1693  ;;  %v1689_v62 = vpop.permute.xlu0 %1688  ;;  %v3167_v10 = vmov 0 }
  0x8b   :  { %v1419_v39 = vpack.c.bf16 %v169_v33, %v144_v27  ;;  %vm2226_vm14 = vmpackc.low %vm3138_vm15, %vm2186_vm2  ;;  %vm3144_vm15 = vcmp.lt.s32.totalorder %v2050_v23, 15 }
  0x8c   :  { %vm2233_vm4 = vmpackc.low %vm3141_vm0, %vm3088_vm1  ;;  %1418 = vmatprep.subr.msk.bf16.mxu0 %vm2158_vm8, %v1416_v38  ;;  %vm3147_vm0 = vcmp.lt.s32.totalorder %v2034_v11, 127  ;;  %1445 = vmatpush1.bf16.msk.msra.mxu1 %vm2226_vm14, %v1443_v40  ;;  %vm3158_vm14 = vcmp.lt.s32.totalorder %v2040_v18, 15 }
  0x8d   :  { %vm2244_vm2 = vmpackc.low %vm3144_vm15, %vm3088_vm1  ;;  %v191_v51 = vsel %vm3147_vm0, %v1685_v45, %v1686_v44  ;;  %1421 = vmatpush1.bf16.msk.msra.mxu0 %vm2218_vm3, %v1419_v39  ;;  %vm3151_vm15 = vcmp.ge.s32.totalorder %v2042_v19, 1  ;;  %vm3152_vm1 = vcmp.lt.s32.totalorder %v2040_v18, 15  ;;  %vm3156_vm3 = vcmp.lt.s32.totalorder %v2046_v21, 15 }
  0x8e   :  { %vm3148_vm7 = vmmov %vm3147_vm0  ;;  %v1449_v57 = vpack.c.bf16 %v191_v51, %v1993_v2  ;;  %v1691_v2 = vunpack.i.h.bf16 %v1689_v62  ;;  %v1704_v7 = vpop.permute.xlu1 %1703  ;;  %v1699_v8 = vpop.permute.xlu0 %1698 }
  0x8f   :  { %v192_v53 = vsel %vm3148_vm7, %v1681_v46, %v1685_v45  ;;  %vm3149_vm8 = vmmov %vm3147_vm0  ;;  %vm3155_vm7 = vmmov 1   ;;  %v1706_v12 = vunpack.i.h.bf16 %v1704_v7  ;;  %v1705_v13 = vunpack.i.l.bf16 %v1704_v7 }
  0x90   :  { %v193_v54 = vsel %vm3149_vm8, %v1680_v48, %v1681_v46  ;;  %vm3150_vm13 = vmmov %vm3147_vm0  ;;  %v1422_v58 = vpack.c.bf16 %v192_v53, %v1988_v1  ;;  %vm3157_vm0 = vcmp.lt.s32.totalorder %v2060_v26, 15  ;;  %v1695_v1 = vunpack.i.l.bf16 %v1694_v61 }
  0x91   :  { %v194_v55 = vsel %vm3150_vm13, %v1686_v44, %v1680_v48  ;;  %vm2263_vm12 = vmand %vm3152_vm1, %vm3151_vm15  ;;  %v1425_v59 = vpack.c.bf16 %v193_v54, %v1983_v0  ;;  %v1696_v0 = vunpack.i.h.bf16 %v1694_v61  ;;  %vm3162_vm15 = vcmp.lt.s32.totalorder %v2048_v22, 15  ;;  %v78_v54 = vld [vmem:[%s3064_s1] sm:$0xff]  ;;  %v463_v44 = vld [vmem:[%s3065_s3 + $0x10] sm:$0xff] }
  0x92   :  { %v3154_v56 = vsel %vm2263_vm12, 4294967295, %v3153_v56  ;;  %v1446_v60 = vpack.c.bf16 %v194_v55, %v2000_v4  ;;  %vm1426_vm1 = vmpackc.low %vm3156_vm3, %vm3155_vm7  ;;  %v1690_v4 = vunpack.i.l.bf16 %v1689_v62  ;;  %1424 = vmatprep.subr.msk.bf16.mxu0 %vm2233_vm4, %v1422_v58  ;;  %vm3165_vm4 = vcmp.ge.s32.totalorder %v2046_v21, 1  ;;  %v260_v41 = vpop.permute.xlu1 %259  ;;  %v258_v42 = vpop.permute.xlu0 %257 }
  0x93   :  { %vm1450_vm8 = vmpackc.low %vm3157_vm0, %vm3155_vm7  ;;  %vm3092_vm7 = vcmp.lt.s32.totalorder %v2034_v11, 113  ;;  %1427 = vmatpush1.bf16.msk.msra.mxu0 %vm1426_vm1, %v1425_v59  ;;  %vm3161_vm0 = vcmp.ge.s32.totalorder %v2050_v23, 1  ;;  %v1701_v14 = vunpack.i.h.bf16 %v1699_v8  ;;  %v1700_v16 = vunpack.i.l.bf16 %v1699_v8 }
  0x94   :  { %1448 = vmatprep.subr.msk.bf16.mxu1 %vm2244_vm2, %v1446_v60  ;;  %vm2289_vm3 = vmpackc.low %vm3158_vm14, %vm2263_vm12  ;;  %vm3093_vm2 = vcmp.lt.s32.totalorder %v2034_v11, 112  ;;  %vm3166_vm14 = vcmp.lt.s32.totalorder %v2044_v20, 15  ;;  %vm3169_vm1 = vcmp.ge.s32.totalorder %v2060_v26, 1  ;;  %v216_v24 = vsel %vm3092_vm7, %v1695_v1, %v1696_v0 }
  0x95   :  { %vm2298_vm13 = vmand %vm3162_vm15, %vm3161_vm0  ;;  %1451 = vmatpush1.bf16.msk.msra.mxu1 %vm1450_vm8, %v1449_v57  ;;  %vm3170_vm8 = vcmp.lt.s32.totalorder %v2058_v25, 15  ;;  %v217_v27 = vsel %vm3092_vm7, %v1691_v2, %v1695_v1  ;;  %v218_v28 = vsel %vm3092_vm7, %v1690_v4, %v1691_v2  ;;  %v219_v30 = vsel %vm3092_vm7, %v1696_v0, %v1690_v4  ;;  %v79_v57 = vld [vmem:[%s3064_s1 + $0x8] sm:$0xff] }
  0x96   :  { %v3164_v3 = vsel %vm2298_vm13, 4294967295, %v3163_v3  ;;  %vm2307_vm12 = vmand %vm3166_vm14, %vm3165_vm4  ;;  %vm3173_vm0 = vcmp.lt.s32.totalorder %v2048_v22, 15  ;;  %v241_v31 = vsel %vm3093_vm2, %v1705_v13, %v1706_v12  ;;  %v242_v32 = vsel %vm3093_vm2, %v1701_v14, %v1705_v13  ;;  %v264_v46 = vpop.permute.xlu1 %263  ;;  %v262_v48 = vpop.permute.xlu0 %261 }
  0x97   :  { %v3168_v10 = vsel %vm2307_vm12, 4294967295, %v3167_v10  ;;  %vm2315_vm15 = vmand %vm3170_vm8, %vm3169_vm1  ;;  %v243_v33 = vsel %vm3093_vm2, %v1700_v16, %v1701_v14  ;;  %v244_v36 = vsel %vm3093_vm2, %v1706_v12, %v1700_v16  ;;  %v1455_v37 = vpack.c.bf16 %v241_v31, %v216_v24 }
  0x98   :  { %v3172_v17 = vsel %vm2315_vm15, 4294967295, %v3171_v17  ;;  %vm1453_vm4 = vmpackc.low %vm3173_vm0, %vm2298_vm13  ;;  %v1428_v38 = vpack.c.bf16 %v242_v32, %v217_v27  ;;  %v1431_v39 = vpack.c.bf16 %v243_v33, %v218_v28  ;;  %v1452_v40 = vpack.c.bf16 %v244_v36, %v219_v30 }
  0x99   :  { %vm1432_vm1 = vmpackc.low %vm3166_vm14, %vm2307_vm12  ;;  %vm3174_vm7 = vcmp.lt.s32.totalorder %v2042_v19, 15  ;;  %vm3175_vm2 = vcmp.lt.s32.totalorder %v2040_v18, 15  ;;  %vm3178_vm14 = vcmp.lt.s32.totalorder %v2050_v23, 15  ;;  %vm3179_vm12 = vcmp.lt.s32.totalorder %v2048_v22, 15 }
  0x9a   :  { %vm1456_vm0 = vmpackc.low %vm3170_vm8, %vm2315_vm15  ;;  %1430 = vmatprep.subr.msk.bf16.mxu0 %vm2289_vm3, %v1428_v38  ;;  %1454 = vmatprep.subr.msk.bf16.mxu1 %vm1453_vm4, %v1452_v40  ;;  %vm265_vm8 = vcmp.lt.s32.totalorder %v2034_v11, 111  ;;  %vm3186_vm3 = vcmp.lt.s32.totalorder %v2060_v26, 15 }
  0x9b   :  { %vm2351_vm13 = vmand %vm3175_vm2, %vm3174_vm7  ;;  %1433 = vmatpush1.bf16.msk.msra.mxu0 %vm1432_vm1, %v1431_v39  ;;  %1457 = vmatpush1.bf16.msk.msra.mxu1 %vm1456_vm0, %v1455_v37  ;;  %vm3182_vm7 = vcmp.lt.s32.totalorder %v2046_v21, 15  ;;  %vm3183_vm2 = vcmp.lt.s32.totalorder %v2044_v20, 15  ;;  %v269_v50 = vsel %vm265_vm8, %v264_v46, %v258_v42  ;;  %v266_v51 = vsel %vm265_vm8, %v262_v48, %v264_v46 }
  0x9c   :  { %vm2361_vm11 = vmand %vm3179_vm12, %vm3178_vm14  ;;  %vm3187_vm12 = vcmp.lt.s32.totalorder %v2058_v25, 15  ;;  %v267_v53 = vsel %vm265_vm8, %v260_v41, %v262_v48  ;;  %vm292_vm1 = vcmask 588800   ;;  %v268_v55 = vsel %vm265_vm8, %v258_v42, %v260_v41 }
  0x9d   :  { %vm2370_vm15 = vmand %vm3183_vm2, %vm3182_vm7  ;;  %1244 = vmatprep.subr.msk.mxu0 %vm2351_vm13, %v267_v53  ;;  %1262 = vmatprep.subr.msk.mxu1 %vm2361_vm11, %v269_v50  ;;  %vm3099_vm0 = vcmask 130048   ;;  %v465_v53 = vld [vmem:[%s3066_s4] sm:$0xff]  ;;  %vm3190_vm7 = vcmp.lt.s32.totalorder %v2034_v11, 17 }
  0x9e   :  { %vm2378_vm4 = vmand %vm3187_vm12, %vm3186_vm3 }
  0x9f   :  { %1245 = vmatpush1.msk.msra.mxu0 %vm2370_vm15, %v268_v55  ;;  %1263 = vmatpush1.msk.msra.mxu1 %vm2378_vm4, %v266_v51  ;;  %v462_v51 = vld [vmem:[%s3065_s3 + $0x8] sm:$0xff]  ;;  %vm1459_vm14 = vmpackc.low %vm2066_vm6, %vm2066_vm6 }
  0xa0   :  { %1246 = vmatmul.mubr.msk.f32.vlgmr.msra.gmra.mrb[0].mxu0 %vm292_vm1, %v78_v54  ;;  %1264 = vmatmul.mubr.msk.f32.vlgmr.msra.gmra.mrb[0].mxu1 %vm292_vm1, %v78_v54  ;;  %v466_v54 = vld [vmem:[%s3066_s4 + $0x8] sm:$0xff]  ;;  %vm3191_vm2 = vmmov %vm3190_vm7 }
  0xa1   :  { %369 = vmatprep.mubr.f32.mxu0 %v1935_v6  ;;  %446 = vmatprep.mubr.f32.mxu1 %v1935_v6  ;;  %vm1462_vm3 = vmpackc.low %vm2076_vm9, %vm2076_vm9  ;;  %vm3202_vm9 = vcmp.ge.s32.totalorder %v2044_v20, 1 }
  0xa2   :  { %vm3192_vm12 = vmmov %vm3191_vm2 }
  0xa3   :  { %vm3193_vm6 = vmmov %vm3191_vm2 }
  0xa4   :  { %1247 = vmatmul.mubr.msk.f32.gmra.mrb[2].mxu0 %vm292_vm1, %v79_v57  ;;  %1265 = vmatmul.mubr.msk.f32.gmra.mrb[2].mxu1 %vm292_vm1, %v79_v57  ;;  %vm1511_vm1 = vmpackc.low %vm2084_vm10, %vm2084_vm10  ;;  %vm3197_vm10 = vcmp.lt.s32.totalorder %v2034_v11, 16 }
  0xa5   :  { %1298 = vmatprep.mubr.msk.f32.mxu0 %vm3099_vm0, %v462_v51  ;;  %1332 = vmatprep.mubr.msk.f32.mxu1 %vm3099_vm0, %v462_v51  ;;  %vm3195_vm0 = vmmov %vm3191_vm2 }
  0xa7   :  { %v285_v58 = vpop.permute.xlu0 %284  ;;  %v290_v2 = vpop.permute.xlu1 %289 }
 0x173   :  { %v365_v59 = vpop.f32.mrb[0].mxu0  ;;  %v442_v60 = vpop.f32.mrb[0].mxu1 }
 0x174   :  { %v367_v61 = vpop.f32.mrb[1].mxu0  ;;  %v443_v62 = vadd.f32 %v442_v60, %v285_v58  ;;  %v444_v0 = vpop.f32.mrb[1].mxu1  ;;  %v366_v4 = vadd.f32 %v365_v59, %v285_v58 }
 0x175   :  { %v445_v1 = vadd.f32 %v444_v0, %v285_v58  ;;  %v368_v63 = vadd.f32 %v367_v61, %v285_v58 }
 0x176   :  { %v455_v12 = vmax.f32 %v443_v62, 0.0  ;;  %v453_v30 = vmax.f32 %v366_v4, 0.0 }
 0x177   :  { %v371_v7 = vpop.f32.mrb[2].mxu0  ;;  %v448_v8 = vpop.f32.mrb[2].mxu1  ;;  %v456_v24 = vmax.f32 %v445_v1, 0.0  ;;  %v454_v33 = vmax.f32 %v368_v63, 0.0 }
 0x178   :  { %v372_v6 = vadd.f32 %v371_v7, %v290_v2  ;;  %v449_v13 = vadd.f32 %v448_v8, %v290_v2  ;;  %v373_v14 = vpop.f32.mrb[3].mxu0  ;;  %v450_v16 = vpop.f32.mrb[3].mxu1 }
 0x179   :  { %v374_v27 = vadd.f32 %v373_v14, %v290_v2  ;;  %v451_v28 = vadd.f32 %v450_v16, %v290_v2 }
 0x17a   :  { %v457_v31 = vmax.f32 %v372_v6, 0.0  ;;  %v459_v32 = vmax.f32 %v449_v13, 0.0 }
 0x17b   :  { %v458_v36 = vmax.f32 %v374_v27, 0.0  ;;  %v460_v37 = vmax.f32 %v451_v28, 0.0 }
 0x17c   :  { %v1709_v38 = vpack.i.bf16 %v457_v31, %v453_v30  ;;  %v1714_v39 = vpack.i.bf16 %v459_v32, %v455_v12  ;;  %v2414_v48 = vpack.c.bf16 %v457_v31, %v453_v30  ;;  %v2416_v50 = vpack.c.bf16 %v459_v32, %v455_v12 }
 0x17d   :  { %v1789_v40 = vpack.i.bf16 %v458_v36, %v454_v33  ;;  %v1794_v41 = vpack.i.bf16 %v460_v37, %v456_v24  ;;  %v2410_v42 = vpack.c.bf16 %v458_v36, %v454_v33  ;;  %v2412_v46 = vpack.c.bf16 %v460_v37, %v456_v24 }
 0x17e   :  { %1710 = vrot.lane.b32.xlu1 %v1709_v38, %s1930_s10 }
 0x17f   :  { %1790 = vrot.lane.b32.xlu0 %v1789_v40, %s1930_s10 }
 0x182   :  { %1715 = vrot.lane.b32.xlu1 %v1714_v39, %s1930_s10 }
 0x183   :  { %1795 = vrot.lane.b32.xlu0 %v1794_v41, %s1930_s10 }
 0x186   :  { %1720 = vrot.lane.b32.xlu1 %v1709_v38, %s1929_s9 }
 0x187   :  { %1800 = vrot.lane.b32.xlu0 %v1789_v40, %s1929_s9 }
 0x18a   :  { %1725 = vrot.lane.b32.xlu1 %v1714_v39, %s1929_s9 }
 0x18b   :  { %1805 = vrot.lane.b32.xlu0 %v1794_v41, %s1929_s9 }
 0x18e   :  { %1730 = vrot.lane.b32.xlu1 %v1709_v38, %s1931_s11 }
 0x18f   :  { %1810 = vrot.lane.b32.xlu0 %v1789_v40, %s1931_s11 }
 0x192   :  { %1735 = vrot.lane.b32.xlu1 %v1714_v39, %s1931_s11 }
 0x193   :  { %1815 = vrot.lane.b32.xlu0 %v1794_v41, %s1931_s11 }
 0x196   :  { %1740 = vrot.lane.b32.xlu1 %v1709_v38, %s1932_s0 }
 0x197   :  { %1820 = vrot.lane.b32.xlu0 %v1789_v40, %s1932_s0 }
 0x19a   :  { %1745 = vrot.lane.b32.xlu1 %v1714_v39, %s1932_s0 }
 0x19b   :  { %1825 = vrot.lane.b32.xlu0 %v1794_v41, %s1932_s0 }
 0x19e   :  { %1750 = vrot.lane.b32.xlu1 %v1709_v38, %s1933_s12 }
 0x19f   :  { %1830 = vrot.lane.b32.xlu0 %v1789_v40, %s1933_s12 }
 0x1a2   :  { %1755 = vrot.lane.b32.xlu1 %v1714_v39, %s1933_s12 }
 0x1a3   :  { %1835 = vrot.lane.b32.xlu0 %v1794_v41, %s1933_s12 }
 0x1a6   :  { %1760 = vrot.lane.b32.xlu1 %v1709_v38, %s1934_s13 }
 0x1a7   :  { %1840 = vrot.lane.b32.xlu0 %v1789_v40, %s1934_s13 }
 0x1aa   :  { %1765 = vrot.lane.b32.xlu1 %v1714_v39, %s1934_s13 }
 0x1ab   :  { %1845 = vrot.lane.b32.xlu0 %v1794_v41, %s1934_s13 }
 0x1ae   :  { %1770 = vrot.lane.b32.xlu1 %v1709_v38, %s1936_s14 }
 0x1af   :  { %1850 = vrot.lane.b32.xlu0 %v1789_v40, %s1936_s14 }
 0x1b2   :  { %1775 = vrot.lane.b32.xlu1 %v1714_v39, %s1936_s14 }
 0x1b3   :  { %1855 = vrot.lane.b32.xlu0 %v1794_v41, %s1936_s14 }
 0x1b6   :  { %1780 = vrot.lane.b32.xlu1 %v1709_v38, %s1938_s15 }
 0x1b7   :  { %1860 = vrot.lane.b32.xlu0 %v1789_v40, %s1938_s15 }
 0x1ba   :  { %1785 = vrot.lane.b32.xlu1 %v1714_v39, %s1938_s15 }
 0x1bb   :  { %1865 = vrot.lane.b32.xlu0 %v1794_v41, %s1938_s15 }
 0x1be   :  { %725 = vperm.xlu1 %1708, %v465_v53  }
 0x1bf   :  { %730 = vperm.xlu0 %1707, %v466_v54  }
 0x1f0   :  { %v1711_v55 = vpop.permute.xlu1 %1710 }
 0x1f1   :  { %v1713_v57 = vunpack.i.h.bf16 %v1711_v55  ;;  %v1712_v58 = vunpack.i.l.bf16 %v1711_v55  ;;  %v1791_v59 = vpop.permute.xlu0 %1790 }
 0x1f2   :  { %v1793_v60 = vunpack.i.h.bf16 %v1791_v59  ;;  %v1792_v61 = vunpack.i.l.bf16 %v1791_v59 }
 0x1f4   :  { %v487_v62 = vsel %vm3190_vm7, %v1712_v58, %v1792_v61  ;;  %v488_v0 = vsel %vm3191_vm2, %v1713_v57, %v1793_v60  ;;  %v1716_v1 = vpop.permute.xlu1 %1715  ;;  %vm3194_vm7 = vmmov %vm3191_vm2 }
 0x1f5   :  { %v1458_v2 = vpack.c.bf16 %v488_v0, %v487_v62  ;;  %v1718_v4 = vunpack.i.h.bf16 %v1716_v1  ;;  %v1717_v63 = vunpack.i.l.bf16 %v1716_v1  ;;  %v1796_v7 = vpop.permute.xlu0 %1795 }
 0x1f6   :  { %v1798_v8 = vunpack.i.h.bf16 %v1796_v7  ;;  %v1797_v12 = vunpack.i.l.bf16 %v1796_v7 }
 0x1f7   :  { %v486_v29 = vsel %vm3192_vm12, %v1793_v60, %v1718_v4  ;;  %v485_v6 = vsel %vm3193_vm6, %v1792_v61, %v1717_v63  ;;  %1460 = vmatprep.subr.msk.bf16.mxu0 %vm1459_vm14, %v1458_v2  ;;  %vm1514_vm12 = vmpackc.low %vm2119_vm5, %vm2119_vm5  ;;  %vm3199_vm5 = vcmp.ge.s32.totalorder %v2040_v18, 1 }
 0x1f8   :  { %v483_v13 = vsel %vm3194_vm7, %v1717_v63, %v1797_v12  ;;  %v484_v14 = vsel %vm3191_vm2, %v1718_v4, %v1798_v8  ;;  %v489_v16 = vsel %vm3195_vm0, %v1797_v12, %v1712_v58  ;;  %v1721_v24 = vpop.permute.xlu1 %1720  ;;  %vm3196_vm14 = vmmov %vm3195_vm0  ;;  %v1513_v32 = vpack.c.bf16 %v486_v29, %v485_v6 }
 0x1f9   :  { %v490_v27 = vsel %vm3196_vm14, %v1798_v8, %v1713_v57  ;;  %v1510_v35 = vpack.c.bf16 %v484_v14, %v483_v13  ;;  %v1723_v28 = vunpack.i.h.bf16 %v1721_v24  ;;  %v1722_v30 = vunpack.i.l.bf16 %v1721_v24  ;;  %v1801_v31 = vpop.permute.xlu0 %1800  ;;  %vm3198_vm0 = vmmov %vm3197_vm10 }
 0x1fa   :  { %v1461_v33 = vpack.c.bf16 %v490_v27, %v489_v16  ;;  %v1803_v36 = vunpack.i.h.bf16 %v1801_v31  ;;  %v1802_v37 = vunpack.i.l.bf16 %v1801_v31  ;;  %vm1465_vm6 = vmpackc.low %vm3199_vm5, %vm3199_vm5 }
 0x1fb   :  { %1512 = vmatprep.subr.msk.bf16.mxu1 %vm1511_vm1, %v1510_v35  ;;  %vm3200_vm1 = vmmov %vm3198_vm0 }
 0x1fc   :  { %v519_v38 = vsel %vm3197_vm10, %v1722_v30, %v1802_v37  ;;  %v520_v47 = vsel %vm3198_vm0, %v1723_v28, %v1803_v36  ;;  %1463 = vmatpush1.bf16.msk.msra.mxu0 %vm1462_vm3, %v1461_v33  ;;  %v1726_v39 = vpop.permute.xlu1 %1725  ;;  %1515 = vmatpush1.bf16.msk.msra.mxu1 %vm1514_vm12, %v1513_v32  ;;  %vm3201_vm7 = vmmov %vm3198_vm0  ;;  %vm3208_vm10 = vcmp.ge.s32.totalorder %v2048_v22, 1 }
 0x1fd   :  { %v1464_v40 = vpack.c.bf16 %v520_v47, %v519_v38  ;;  %v1728_v41 = vunpack.i.h.bf16 %v1726_v39  ;;  %v1727_v51 = vunpack.i.l.bf16 %v1726_v39  ;;  %v1806_v53 = vpop.permute.xlu0 %1805  ;;  %vm2504_vm3 = vmpackc.low %vm3202_vm9, %vm3202_vm9 }
 0x1fe   :  { %v1808_v54 = vunpack.i.h.bf16 %v1806_v53  ;;  %v1807_v55 = vunpack.i.l.bf16 %v1806_v53  ;;  %vm3205_vm2 = vmmov %vm3198_vm0 }
 0x1ff   :  { %v518_v57 = vsel %vm3200_vm1, %v1803_v36, %v1728_v41  ;;  %v517_v34 = vsel %vm3201_vm7, %v1802_v37, %v1727_v51  ;;  %1466 = vmatprep.subr.msk.bf16.mxu0 %vm1465_vm6, %v1464_v40  ;;  %vm3206_vm12 = vmmov %vm3198_vm0  ;;  %vm3210_vm6 = vcmp.ge.s32.totalorder %v2058_v25, 1  ;;  %vm3211_vm7 = vcmp.lt.s32.totalorder %v2034_v11, 15 }
 0x200   :  { %v515_v59 = vsel %vm3205_vm2, %v1727_v51, %v1807_v55  ;;  %v516_v60 = vsel %vm3206_vm12, %v1728_v41, %v1808_v54  ;;  %vm3207_vm14 = vmmov %vm3198_vm0  ;;  %v1731_v62 = vpop.permute.xlu1 %1730  ;;  %v1519_v7 = vpack.c.bf16 %v518_v57, %v517_v34  ;;  %vm3213_vm2 = vnez %v3113_v52 }
 0x201   :  { %v521_v61 = vsel %vm3207_vm14, %v1807_v55, %v1722_v30  ;;  %vm1517_vm0 = vmpackc.low %vm3208_vm10, %vm3208_vm10  ;;  %v1516_v1 = vpack.c.bf16 %v516_v60, %v515_v59  ;;  %v1733_v2 = vunpack.i.h.bf16 %v1731_v62  ;;  %v1732_v4 = vunpack.i.l.bf16 %v1731_v62  ;;  %v1811_v63 = vpop.permute.xlu0 %1810 }
 0x202   :  { %vm3209_vm5 = vmmov %vm3200_vm1  ;;  %v1813_v12 = vunpack.i.h.bf16 %v1811_v63  ;;  %v1812_v29 = vunpack.i.l.bf16 %v1811_v63  ;;  %vm3214_vm14 = vnez %v3120_v9 }
 0x203   :  { %v522_v0 = vsel %vm3209_vm5, %v1808_v54, %v1723_v28  ;;  %vm1520_vm1 = vmpackc.low %vm3210_vm6, %vm3210_vm6  ;;  %1518 = vmatprep.subr.msk.bf16.mxu1 %vm1517_vm0, %v1516_v1 }
 0x204   :  { %v1467_v8 = vpack.c.bf16 %v522_v0, %v521_v61  ;;  %v551_v6 = vsel %vm3211_vm7, %v1732_v4, %v1812_v29  ;;  %vm3212_vm9 = vmmov %vm3211_vm7  ;;  %v1736_v14 = vpop.permute.xlu1 %1735  ;;  %1521 = vmatpush1.bf16.msk.msra.mxu1 %vm1520_vm1, %v1519_v7 }
 0x205   :  { %v552_v13 = vsel %vm3212_vm9, %v1733_v2, %v1813_v12  ;;  %vm1471_vm12 = vmpackc.low %vm3213_vm2, %vm3213_vm2  ;;  %v1738_v24 = vunpack.i.h.bf16 %v1736_v14  ;;  %v1737_v27 = vunpack.i.l.bf16 %v1736_v14  ;;  %v1816_v35 = vpop.permute.xlu0 %1815  ;;  %vm3221_vm2 = vnez %v3123_v15 }
 0x206   :  { %1469 = vmatpush1.bf16.msk.msra.mxu0 %vm2504_vm3, %v1467_v8  ;;  %v1470_v16 = vpack.c.bf16 %v552_v13, %v551_v6  ;;  %v1818_v28 = vunpack.i.h.bf16 %v1816_v35  ;;  %v1817_v30 = vunpack.i.l.bf16 %v1816_v35  ;;  %vm1474_vm10 = vmpackc.low %vm3214_vm14, %vm3214_vm14  ;;  %vm3228_vm14 = vcmp.ge.s32.totalorder %v2046_v21, 1 }
 0x207   :  { %vm3215_vm0 = vmmov %vm3211_vm7  ;;  %vm3220_vm7 = vnez %v3117_v5 }
 0x208   :  { %v550_v31 = vsel %vm3215_vm0, %v1813_v12, %v1738_v24  ;;  %vm3216_vm3 = vmmov %vm3215_vm0  ;;  %1472 = vmatprep.subr.msk.bf16.mxu0 %vm1471_vm12, %v1470_v16  ;;  %v1741_v37 = vpop.permute.xlu1 %1740 }
 0x209   :  { %v549_v32 = vsel %vm3216_vm3, %v1812_v29, %v1737_v27  ;;  %vm3217_vm5 = vmmov %vm3215_vm0  ;;  %v1743_v39 = vunpack.i.h.bf16 %v1741_v37  ;;  %v1742_v40 = vunpack.i.l.bf16 %v1741_v37  ;;  %v1821_v41 = vpop.permute.xlu0 %1820  ;;  %vm3223_vm3 = vcmp.lt.s32.totalorder %v2034_v11, 1 }
 0x20a   :  { %v547_v52 = vsel %vm3217_vm5, %v1737_v27, %v1817_v30  ;;  %vm3218_vm6 = vmmov %vm3215_vm0  ;;  %v1525_v51 = vpack.c.bf16 %v550_v31, %v549_v32  ;;  %v1823_v54 = vunpack.i.h.bf16 %v1821_v41  ;;  %v1822_v55 = vunpack.i.l.bf16 %v1821_v41 }
 0x20b   :  { %v548_v33 = vsel %vm3218_vm6, %v1738_v24, %v1818_v28  ;;  %vm3219_vm1 = vmmov %vm3215_vm0  ;;  %vm3225_vm6 = vcmp.ge.s32.totalorder %v2042_v19, 1 }
 0x20c   :  { %v553_v36 = vsel %vm3219_vm1, %v1817_v30, %v1732_v4  ;;  %vm1523_vm9 = vmpackc.low %vm3220_vm7, %vm3220_vm7  ;;  %v1522_v47 = vpack.c.bf16 %v548_v33, %v547_v52  ;;  %v583_v5 = vsel %vm3223_vm3, %v1742_v40, %v1822_v55  ;;  %v1746_v57 = vpop.permute.xlu1 %1745 }
 0x20d   :  { %vm1526_vm0 = vmpackc.low %vm3221_vm2, %vm3221_vm2  ;;  %v1748_v58 = vunpack.i.h.bf16 %v1746_v57  ;;  %v1747_v59 = vunpack.i.l.bf16 %v1746_v57  ;;  %v1826_v60 = vpop.permute.xlu0 %1825 }
 0x20e   :  { %vm3222_vm12 = vmmov %vm3219_vm1  ;;  %1524 = vmatprep.subr.msk.bf16.mxu1 %vm1523_vm9, %v1522_v47  ;;  %v1828_v61 = vunpack.i.h.bf16 %v1826_v60  ;;  %v1827_v62 = vunpack.i.l.bf16 %v1826_v60 }
 0x20f   :  { %v554_v38 = vsel %vm3222_vm12, %v1818_v28, %v1733_v2  ;;  %vm3224_vm5 = vmmov %vm3223_vm3  ;;  %1527 = vmatpush1.bf16.msk.msra.mxu1 %vm1526_vm0, %v1525_v51 }
 0x210   :  { %v1473_v53 = vpack.c.bf16 %v554_v38, %v553_v36  ;;  %v584_v15 = vsel %vm3224_vm5, %v1743_v39, %v1823_v54  ;;  %vm1477_vm1 = vmpackc.low %vm3225_vm6, %vm3225_vm6  ;;  %v1751_v7 = vpop.permute.xlu1 %1750 }
 0x211   :  { %v1476_v34 = vpack.c.bf16 %v584_v15, %v583_v5  ;;  %vm3226_vm7 = vmmov %vm3223_vm3  ;;  %v1753_v6 = vunpack.i.h.bf16 %v1751_v7  ;;  %v1831_v13 = vpop.permute.xlu0 %1830  ;;  %v1752_v16 = vunpack.i.l.bf16 %v1751_v7 }
 0x212   :  { %1475 = vmatpush1.bf16.msk.msra.mxu0 %vm1474_vm10, %v1473_v53  ;;  %v582_v0 = vsel %vm3226_vm7, %v1823_v54, %v1748_v58  ;;  %vm3227_vm9 = vmmov %vm3223_vm3  ;;  %v1833_v24 = vunpack.i.h.bf16 %v1831_v13  ;;  %v1832_v27 = vunpack.i.l.bf16 %v1831_v13 }
 0x213   :  { %v581_v9 = vsel %vm3227_vm9, %v1822_v55, %v1747_v59  ;;  %1478 = vmatprep.subr.msk.bf16.mxu0 %vm1477_vm1, %v1476_v34  ;;  %vm2571_vm10 = vmpackc.low %vm3228_vm14, %vm3228_vm14  ;;  %vm3236_vm1 = vcmp.ge.s32.totalorder %v2060_v26, 1  ;;  %vm3237_vm9 = vcmp.lt.s32.totalorder %v2034_v11, 127 }
 0x214   :  { %vm3231_vm2 = vmmov %vm3223_vm3  ;;  %vm3234_vm3 = vcmp.ge.s32.totalorder %v2050_v23, 1  ;;  %v1531_v8 = vpack.c.bf16 %v582_v0, %v581_v9  ;;  %v1756_v35 = vpop.permute.xlu1 %1755  ;;  %v615_v32 = vsel %vm3237_vm9, %v1752_v16, %v1832_v27 }
 0x215   :  { %v579_v2 = vsel %vm3231_vm2, %v1747_v59, %v1827_v62  ;;  %vm3232_vm0 = vmmov %vm3231_vm2  ;;  %v1758_v28 = vunpack.i.h.bf16 %v1756_v35  ;;  %v1757_v30 = vunpack.i.l.bf16 %v1756_v35  ;;  %v1836_v31 = vpop.permute.xlu0 %1835 }
 0x216   :  { %v580_v4 = vsel %vm3232_vm0, %v1748_v58, %v1828_v61  ;;  %vm3233_vm12 = vmmov %vm3232_vm0  ;;  %v1838_v33 = vunpack.i.h.bf16 %v1836_v31  ;;  %v1837_v36 = vunpack.i.l.bf16 %v1836_v31 }
 0x217   :  { %v585_v63 = vsel %vm3233_vm12, %v1827_v62, %v1742_v40  ;;  %vm1529_vm5 = vmpackc.low %vm3234_vm3, %vm3234_vm3  ;;  %v1528_v29 = vpack.c.bf16 %v580_v4, %v579_v2 }
 0x218   :  { %vm3235_vm6 = vmmov %vm3232_vm0  ;;  %vm3241_vm0 = vcmp.lt.s32.totalorder %v2042_v19, 15  ;;  %v1761_v41 = vpop.permute.xlu1 %1760 }
 0x219   :  { %v586_v12 = vsel %vm3235_vm6, %v1828_v61, %v1743_v39  ;;  %vm1532_vm7 = vmpackc.low %vm3236_vm1, %vm3236_vm1  ;;  %1530 = vmatprep.subr.msk.bf16.mxu1 %vm1529_vm5, %v1528_v29  ;;  %vm3247_vm1 = vcmp.lt.s32.totalorder %v2046_v21, 15  ;;  %v1763_v54 = vunpack.i.h.bf16 %v1761_v41  ;;  %v1841_v55 = vpop.permute.xlu0 %1840 }
 0x21a   :  { %v1479_v14 = vpack.c.bf16 %v586_v12, %v585_v63  ;;  %1533 = vmatpush1.bf16.msk.msra.mxu1 %vm1532_vm7, %v1531_v8  ;;  %vm3238_vm14 = vmmov %vm3237_vm9  ;;  %v1843_v15 = vunpack.i.h.bf16 %v1841_v55  ;;  %v1842_v57 = vunpack.i.l.bf16 %v1841_v55 }
 0x21b   :  { %1535 = vmatprep.subr.bf16.mxu1 %v2412_v46  ;;  %v616_v52 = vsel %vm3238_vm14, %v1753_v6, %v1833_v24  ;;  %vm3239_vm2 = vmmov %vm3237_vm9  ;;  %vm3249_vm14 = vcmp.lt.s32.totalorder %v2050_v23, 15 }
 0x21c   :  { %1481 = vmatpush1.bf16.msk.msra.mxu0 %vm2571_vm10, %v1479_v14  ;;  %v614_v37 = vsel %vm3239_vm2, %v1833_v24, %v1758_v28  ;;  %vm3240_vm10 = vmmov %vm3239_vm2  ;;  %v1489_v19 = vpack.c.bf16 %v616_v52, %v615_v32  ;;  %v1766_v21 = vpop.permute.xlu1 %1765  ;;  %v1058_v32 = vld [vmem:[%s3067_s5 + $0x1a0] sm:$0xff] }
 0x21d   :  { %1483 = vmatprep.subr.bf16.mxu0 %v2410_v42  ;;  %v613_v38 = vsel %vm3240_vm10, %v1832_v27, %v1757_v30  ;;  %vm2604_vm12 = vmpackc.low %vm3241_vm0, %vm3241_vm0  ;;  %vm3250_vm10 = vcmp.lt.s32.totalorder %v2060_v26, 15  ;;  %v1767_v34 = vunpack.i.l.bf16 %v1766_v21  ;;  %v1846_v23 = vpop.permute.xlu0 %1845 }
 0x21e   :  { %v1486_v46 = vpack.c.bf16 %v614_v37, %v613_v38  ;;  %vm3244_vm3 = vmmov %vm3239_vm2  ;;  %1537 = vmatpush1.bf16.msra.mxu1 %v2416_v50  ;;  %v1768_v50 = vunpack.i.h.bf16 %v1766_v21  ;;  %v1848_v60 = vunpack.i.h.bf16 %v1846_v23  ;;  %v1847_v61 = vunpack.i.l.bf16 %v1846_v23 }
 0x21f   :  { %v611_v47 = vsel %vm3244_vm3, %v1757_v30, %v1837_v36  ;;  %vm3245_vm5 = vmmov %vm3239_vm2  ;;  %vm3251_vm3 = vcmp.lt.s32.totalorder %v2034_v11, 113 }
 0x220   :  { %v612_v39 = vsel %vm3245_vm5, %v1758_v28, %v1838_v33  ;;  %vm3246_vm6 = vmmov %vm3239_vm2  ;;  %1485 = vmatpush1.bf16.msra.mxu0 %v2414_v48  ;;  %v1762_v48 = vunpack.i.l.bf16 %v1761_v41  ;;  %v1771_v4 = vpop.permute.xlu1 %1770 }
 0x221   :  { %v617_v40 = vsel %vm3246_vm6, %v1837_v36, %v1752_v16  ;;  %vm1490_vm7 = vmpackc.low %vm3247_vm1, %vm3247_vm1  ;;  %v1541_v53 = vpack.c.bf16 %v612_v39, %v611_v47  ;;  %1488 = vmatprep.subr.msk.bf16.mxu0 %vm2604_vm12, %v1486_v46  ;;  %vm3255_vm1 = vnez %v3154_v56  ;;  %v1773_v12 = vunpack.i.h.bf16 %v1771_v4  ;;  %v1851_v29 = vpop.permute.xlu0 %1850 }
 0x222   :  { %vm3248_vm9 = vmmov %vm3239_vm2  ;;  %v647_v58 = vsel %vm3251_vm3, %v1762_v48, %v1842_v57  ;;  %v1772_v13 = vunpack.i.l.bf16 %v1771_v4  ;;  %v1853_v14 = vunpack.i.h.bf16 %v1851_v29  ;;  %v1852_v16 = vunpack.i.l.bf16 %v1851_v29 }
 0x223   :  { %v618_v51 = vsel %vm3248_vm9, %v1838_v33, %v1753_v6  ;;  %vm1539_vm2 = vmpackc.low %vm3249_vm14, %vm3249_vm14  ;;  %vm3256_vm9 = vnez %v3168_v10 }
 0x224   :  { %v1538_v5 = vpack.c.bf16 %v618_v51, %v617_v40  ;;  %vm1542_vm0 = vmpackc.low %vm3250_vm10, %vm3250_vm10  ;;  %1491 = vmatpush1.bf16.msk.msra.mxu0 %vm1490_vm7, %v1489_v19 }
 0x225   :  { %vm3252_vm5 = vmmov %vm3251_vm3  ;;  %v1856_v27 = vpop.permute.xlu0 %1855 }
 0x226   :  { %1540 = vmatprep.subr.msk.bf16.mxu1 %vm1539_vm2, %v1538_v5  ;;  %v648_v59 = vsel %vm3252_vm5, %v1763_v54, %v1843_v15  ;;  %vm3253_vm12 = vmmov %vm3251_vm3  ;;  %vm3261_vm5 = vnez %v3164_v3  ;;  %v1776_v3 = vpop.permute.xlu1 %1775  ;;  %v1858_v28 = vunpack.i.h.bf16 %v1856_v27  ;;  %v1857_v30 = vunpack.i.l.bf16 %v1856_v27  ;;  %v1040_v27 = vld [vmem:[%s3067_s5 + $0x110] sm:$0xff] }
 0x227   :  { %1543 = vmatpush1.bf16.msk.msra.mxu1 %vm1542_vm0, %v1541_v53  ;;  %v646_v26 = vsel %vm3253_vm12, %v1843_v15, %v1768_v50  ;;  %vm3254_vm6 = vmmov %vm3251_vm3  ;;  %v1495_v63 = vpack.c.bf16 %v648_v59, %v647_v58  ;;  %v1777_v24 = vunpack.i.l.bf16 %v1776_v3 }
 0x228   :  { %v645_v62 = vsel %vm3254_vm6, %v1842_v57, %v1767_v34  ;;  %vm1493_vm7 = vmpackc.low %vm3255_vm1, %vm3255_vm1  ;;  %vm3262_vm6 = vnez %v3172_v17  ;;  %v1778_v17 = vunpack.i.h.bf16 %v1776_v3 }
 0x229   :  { %vm1496_vm14 = vmpackc.low %vm3256_vm9, %vm3256_vm9  ;;  %v1492_v0 = vpack.c.bf16 %v646_v26, %v645_v62  ;;  %vm3267_vm9 = vcmp.lt.s32.totalorder %v2040_v18, 15  ;;  %v1861_v39 = vpop.permute.xlu0 %1860  ;;  %v1023_v26 = vld [vmem:[%s3067_s5 + $0x88] sm:$0xff]  ;;  %v1054_v62 = vld [vmem:[%s3067_s5 + $0x180] sm:$0xff] }
 0x22a   :  { %vm3257_vm2 = vmmov %vm3251_vm3  ;;  %v1781_v38 = vpop.permute.xlu1 %1780  ;;  %v1863_v19 = vunpack.i.h.bf16 %v1861_v39  ;;  %v1862_v51 = vunpack.i.l.bf16 %v1861_v39  ;;  %v1060_v39 = vld [vmem:[%s3067_s5 + $0x1b0] sm:$0xff] }
 0x22b   :  { %v643_v9 = vsel %vm3257_vm2, %v1767_v34, %v1847_v61  ;;  %vm3258_vm10 = vmmov %vm3257_vm2  ;;  %1494 = vmatprep.subr.msk.bf16.mxu0 %vm1493_vm7, %v1492_v0  ;;  %v1783_v47 = vunpack.i.h.bf16 %v1781_v38  ;;  %v1782_v41 = vunpack.i.l.bf16 %v1781_v38  ;;  %v1562_v0 = vpack.c.bf16 %v1023_v26, %v1022_v49  ;;  %v1042_v38 = vld [vmem:[%s3067_s5 + $0x120] sm:$0xff]  ;;  %v1047_v26 = vld [vmem:[%s3067_s5 + $0x148] sm:$0xff] }
 0x22c   :  { %v644_v1 = vsel %vm3258_vm10, %v1768_v50, %v1848_v60  ;;  %vm3259_vm0 = vmmov %vm3257_vm2  ;;  %1497 = vmatpush1.bf16.msk.msra.mxu0 %vm1496_vm14, %v1495_v63  ;;  %vm3263_vm10 = vcmp.lt.s32.totalorder %v2034_v11, 112  ;;  %v1046_v49 = vld [vmem:[%s3067_s5 + $0x140] sm:$0xff] }
 0x22d   :  { %v649_v2 = vsel %vm3259_vm0, %v1847_v61, %v1762_v48  ;;  %vm3260_vm3 = vmmov %vm3259_vm0  ;;  %v1547_v8 = vpack.c.bf16 %v644_v1, %v643_v9  ;;  %v679_v35 = vsel %vm3263_vm10, %v1772_v13, %v1852_v16  ;;  %v711_v55 = vsel %vm265_vm8, %v1782_v41, %v1862_v51  ;;  %v464_v61 = vld [vmem:[%s3065_s3 + $0x18] sm:$0xff]  ;;  %v1055_v9 = vld [vmem:[%s3067_s5 + $0x188] sm:$0xff] }
 0x22e   :  { %v650_v7 = vsel %vm3260_vm3, %v1848_v60, %v1763_v54  ;;  %vm1545_vm12 = vmpackc.low %vm3261_vm5, %vm3261_vm5  ;;  %v712_v5 = vsel %vm265_vm8, %v1783_v47, %v1863_v19  ;;  %v461_v60 = vld [vmem:[%s3065_s3] sm:$0xff]  ;;  %v1594_v4 = vpack.c.bf16 %v1055_v9, %v1054_v62 }
 0x22f   :  { %vm1548_vm2 = vmpackc.low %vm3262_vm6, %vm3262_vm6  ;;  %v1544_v6 = vpack.c.bf16 %v650_v7, %v649_v2  ;;  %vm3273_vm6 = vcmp.lt.s32.totalorder %v2044_v20, 15  ;;  %v1786_v20 = vpop.permute.xlu1 %1785  ;;  %v1507_v58 = vpack.c.bf16 %v712_v5, %v711_v55  ;;  %v1006_v1 = vld [vmem:[%s3067_s5] sm:$0xff]  ;;  %v1007_v2 = vld [vmem:[%s3067_s5 + $0x8] sm:$0xff] }
 0x230   :  { %vm3264_vm0 = vmmov %vm3263_vm10  ;;  %v1788_v53 = vunpack.i.h.bf16 %v1786_v20  ;;  %v1787_v54 = vunpack.i.l.bf16 %v1786_v20  ;;  %v1564_v63 = vpack.c.bf16 %v1007_v2, %v1006_v1  ;;  %v1038_v7 = vld [vmem:[%s3067_s5 + $0x100] sm:$0xff]  ;;  %v1013_v20 = vld [vmem:[%s3067_s5 + $0x38] sm:$0xff]  ;;  %v1612_v1 = vpack.c.bf16 %v1047_v26, %v1046_v49 }
 0x231   :  { %1546 = vmatprep.subr.msk.bf16.mxu1 %vm1545_vm12, %v1544_v6  ;;  %v680_v56 = vsel %vm3264_vm0, %v1773_v12, %v1853_v14  ;;  %vm3265_vm1 = vmmov %vm3264_vm0  ;;  %v1025_v6 = vld [vmem:[%s3067_s5 + $0x98] sm:$0xff]  ;;  %v1032_v2 = vld [vmem:[%s3067_s5 + $0xd0] sm:$0xff] }
 0x232   :  { %1549 = vmatpush1.bf16.msk.msra.mxu1 %vm1548_vm2, %v1547_v8  ;;  %v678_v31 = vsel %vm3265_vm1, %v1853_v14, %v1778_v17  ;;  %vm3266_vm7 = vmmov %vm3264_vm0  ;;  %v1501_v18 = vpack.c.bf16 %v680_v56, %v679_v35  ;;  %v709_v57 = vsel %vm265_vm8, %v1862_v51, %v1787_v54  ;;  %v1039_v8 = vld [vmem:[%s3067_s5 + $0x108] sm:$0xff]  ;;  %v1057_v14 = vld [vmem:[%s3067_s5 + $0x198] sm:$0xff] }
 0x233   :  { %v677_v10 = vsel %vm3266_vm7, %v1852_v16, %v1777_v24  ;;  %vm2678_vm14 = vmpackc.low %vm3267_vm9, %vm3267_vm9  ;;  %vm3276_vm7 = vcmp.lt.s32.totalorder %v2058_v25, 15  ;;  %v710_v25 = vsel %vm265_vm8, %v1863_v19, %v1788_v53  ;;  %v1596_v29 = vpack.c.bf16 %v1039_v8, %v1038_v7  ;;  %v1041_v56 = vld [vmem:[%s3067_s5 + $0x118] sm:$0xff]  ;;  %v1012_v51 = vld [vmem:[%s3067_s5 + $0x30] sm:$0xff] }
 0x234   :  { %v1498_v52 = vpack.c.bf16 %v678_v31, %v677_v10  ;;  %vm3270_vm3 = vmmov %vm3264_vm0  ;;  %v1504_v21 = vpack.c.bf16 %v710_v25, %v709_v57  ;;  %v1600_v31 = vpack.c.bf16 %v1041_v56, %v1040_v27  ;;  %v1061_v19 = vld [vmem:[%s3067_s5 + $0x1b8] sm:$0xff]  ;;  %v1576_v55 = vpack.c.bf16 %v1013_v20, %v1012_v51  ;;  %v1030_v25 = vld [vmem:[%s3067_s5 + $0xc0] sm:$0xff] }
 0x235   :  { %v675_v33 = vsel %vm3270_vm3, %v1777_v24, %v1857_v30  ;;  %vm3271_vm5 = vmmov %vm3264_vm0  ;;  %v1009_v24 = vld [vmem:[%s3067_s5 + $0x18] sm:$0xff]  ;;  %v1031_v57 = vld [vmem:[%s3067_s5 + $0xc8] sm:$0xff] }
 0x236   :  { %v676_v36 = vsel %vm3271_vm5, %v1778_v17, %v1858_v28  ;;  %vm3272_vm12 = vmmov %vm3264_vm0  ;;  %1500 = vmatprep.subr.msk.bf16.mxu0 %vm2678_vm14, %v1498_v52  ;;  %vm3277_vm5 = vcmask 130048   ;;  %v1008_v17 = vld [vmem:[%s3067_s5 + $0x10] sm:$0xff]  ;;  %v1059_v52 = vld [vmem:[%s3067_s5 + $0x1a8] sm:$0xff] }
 0x237   :  { %v681_v37 = vsel %vm3272_vm12, %v1857_v30, %v1772_v13  ;;  %vm1502_vm2 = vmpackc.low %vm3273_vm6, %vm3273_vm6  ;;  %v1553_v46 = vpack.c.bf16 %v676_v36, %v675_v33  ;;  %v1056_v13 = vld [vmem:[%s3067_s5 + $0x190] sm:$0xff]  ;;  %v1568_v35 = vpack.c.bf16 %v1009_v24, %v1008_v17  ;;  %v1027_v30 = vld [vmem:[%s3067_s5 + $0xa8] sm:$0xff]  ;;  %v1602_v36 = vpack.c.bf16 %v1059_v52, %v1058_v32 }
 0x238   :  { %vm3274_vm10 = vmmov %vm3264_vm0  ;;  %vm3275_vm0 = vcmp.lt.s32.totalorder %v2048_v22, 15  ;;  %1503 = vmatpush1.bf16.msk.msra.mxu0 %vm1502_vm2, %v1501_v18  ;;  %v1866_v22 = vpop.permute.xlu0 %1865  ;;  %v1598_v3 = vpack.c.bf16 %v1057_v14, %v1056_v13  ;;  %v1010_v33 = vld [vmem:[%s3067_s5 + $0x20] sm:$0xff]  ;;  %v1043_v18 = vld [vmem:[%s3067_s5 + $0x128] sm:$0xff] }
 0x239   :  { %v682_v42 = vsel %vm3274_vm10, %v1858_v28, %v1773_v12  ;;  %vm1551_vm1 = vmpackc.low %vm3275_vm0, %vm3275_vm0  ;;  %v1868_v48 = vunpack.i.h.bf16 %v1866_v22  ;;  %v1867_v15 = vunpack.i.l.bf16 %v1866_v22  ;;  %v1024_v12 = vld [vmem:[%s3067_s5 + $0x90] sm:$0xff]  ;;  %v1026_v28 = vld [vmem:[%s3067_s5 + $0xa0] sm:$0xff] }
 0x23a   :  { %v1550_v40 = vpack.c.bf16 %v682_v42, %v681_v37  ;;  %vm1554_vm9 = vmpackc.low %vm3276_vm7, %vm3276_vm7  ;;  %v1566_v16 = vpack.c.bf16 %v1025_v6, %v1024_v12  ;;  %v1570_v10 = vpack.c.bf16 %v1027_v30, %v1026_v28  ;;  %v1011_v37 = vld [vmem:[%s3067_s5 + $0x28] sm:$0xff]  ;;  %v1045_v22 = vld [vmem:[%s3067_s5 + $0x138] sm:$0xff] }
 0x23b   :  { %vm1505_vm14 = vmpackc.low %vm2351_vm13, %vm2351_vm13  ;;  %v707_v50 = vsel %vm265_vm8, %v1787_v54, %v1867_v15  ;;  %v708_v34 = vsel %vm265_vm8, %v1788_v53, %v1868_v48  ;;  %v713_v23 = vsel %vm265_vm8, %v1867_v15, %v1782_v41  ;;  %v714_v43 = vsel %vm265_vm8, %v1868_v48, %v1783_v47  ;;  %v1029_v47 = vld [vmem:[%s3067_s5 + $0xb8] sm:$0xff]  ;;  %v1044_v54 = vld [vmem:[%s3067_s5 + $0x130] sm:$0xff] }
 0x23c   :  { %1552 = vmatprep.subr.msk.bf16.mxu1 %vm1551_vm1, %v1550_v40  ;;  %vm1508_vm3 = vmpackc.low %vm2370_vm15, %vm2370_vm15  ;;  %v1559_v59 = vpack.c.bf16 %v708_v34, %v707_v50  ;;  %v1556_v45 = vpack.c.bf16 %v714_v43, %v713_v23  ;;  %1506 = vmatprep.subr.msk.bf16.mxu0 %vm1505_vm14, %v1504_v21  ;;  %v1572_v42 = vpack.c.bf16 %v1011_v37, %v1010_v33  ;;  %v1062_v21 = vld [vmem:[%s3067_s5 + $0x1c0] sm:$0xff]  ;;  %v1065_v13 = vld [vmem:[%s3067_s5 + $0x1d8] sm:$0xff] }
 0x23d   :  { %1555 = vmatpush1.bf16.msk.msra.mxu1 %vm1554_vm9, %v1553_v46  ;;  %vm1557_vm13 = vmpackc.low %vm2361_vm11, %vm2361_vm11  ;;  %1509 = vmatpush1.bf16.msk.msra.mxu0 %vm1508_vm3, %v1507_v58  ;;  %v1028_v46 = vld [vmem:[%s3067_s5 + $0xb0] sm:$0xff]  ;;  %v1604_v40 = vpack.c.bf16 %v1043_v18, %v1042_v38  ;;  %v1606_v53 = vpack.c.bf16 %v1061_v19, %v1060_v39  ;;  %v1608_v5 = vpack.c.bf16 %v1045_v22, %v1044_v54  ;;  %v726_v48 = vpop.permute.xlu1 %725  ;;  %v1063_v58 = vld [vmem:[%s3067_s5 + $0x1c8] sm:$0xff] }
 0x23e   :  { %vm1560_vm15 = vmpackc.low %vm2378_vm4, %vm2378_vm4  ;;  %1558 = vmatprep.subr.msk.bf16.mxu1 %vm1557_vm13, %v1556_v45  ;;  %1563 = vmatprep.subr.bf16.mxu0 %v1562_v0  ;;  %v1574_v41 = vpack.c.bf16 %v1029_v47, %v1028_v46  ;;  %v1578_v23 = vpack.c.bf16 %v1031_v57, %v1030_v25  ;;  %v1014_v43 = vld [vmem:[%s3067_s5 + $0x40] sm:$0xff]  ;;  %v731_v7 = vpop.permute.xlu0 %730  ;;  %v1016_v14 = vld [vmem:[%s3067_s5 + $0x50] sm:$0xff]  ;;  %vm3279_vm4 = vcmp.lt.s32.totalorder %v2034_v11, 127 }
 0x23f   :  { %vm3278_vm11 = vmmov %vm3277_vm5  ;;  %v1048_v56 = vld [vmem:[%s3067_s5 + $0x150] sm:$0xff]  ;;  %v1049_v28 = vld [vmem:[%s3067_s5 + $0x158] sm:$0xff] }
 0x240   :  { %805 = vmatmul.mubr.f32.vlgmr.msra.gmra.mrb[4].mxu0 %v461_v60  ;;  %v1616_v37 = vpack.c.bf16 %v1049_v28, %v1048_v56  ;;  %v1034_v47 = vld [vmem:[%s3067_s5 + $0xe0] sm:$0xff]  ;;  %v1035_v39 = vld [vmem:[%s3067_s5 + $0xe8] sm:$0xff]  ;;  %v1037_v25 = vld [vmem:[%s3067_s5 + $0xf8] sm:$0xff] }
 0x241   :  { %1561 = vmatpush1.bf16.msk.msra.mxu1 %vm1560_vm15, %v1559_v59  ;;  %1299 = vmatprep.mubr.msk.f32.mxu0 %vm3277_vm5, %v464_v61  ;;  %v1015_v59 = vld [vmem:[%s3067_s5 + $0x48] sm:$0xff]  ;;  %v1018_v51 = vld [vmem:[%s3067_s5 + $0x60] sm:$0xff]  ;;  %v1068_v57 = vld [vmem:[%s3067_s5 + $0x1f0] sm:$0xff] }
 0x242   :  { %1595 = vmatprep.subr.bf16.mxu1 %v1594_v4  ;;  %1565 = vmatpush3.bf16.msra.mxu0 %v1564_v63  ;;  %v1033_v4 = vld [vmem:[%s3067_s5 + $0xd8] sm:$0xff]  ;;  %v1064_v63 = vld [vmem:[%s3067_s5 + $0x1d0] sm:$0xff]  ;;  %v1067_v19 = vld [vmem:[%s3067_s5 + $0x1e8] sm:$0xff] }
 0x243   :  { %1567 = vmatprep.subr.bf16.mxu0 %v1566_v16  ;;  %v1582_v6 = vpack.c.bf16 %v1033_v4, %v1032_v2  ;;  %v1017_v16 = vld [vmem:[%s3067_s5 + $0x58] sm:$0xff]  ;;  %v1614_v27 = vpack.c.bf16 %v1065_v13, %v1064_v63  ;;  %v1019_v20 = vld [vmem:[%s3067_s5 + $0x68] sm:$0xff]  ;;  %vm3280_vm12 = vmmov %vm3279_vm4 }
 0x244   :  { %882 = vmatmul.mubr.f32.vlgmr.msra.gmra.mrb[4].mxu1 %v461_v60  ;;  %811 = vmatmul.mubr.f32.gmra.mrb[6].mxu0 %v463_v44  ;;  %v1588_v22 = vpack.c.bf16 %v1019_v20, %v1018_v51  ;;  %vm3281_vm6 = vmmov %vm3279_vm4 }
 0x245   :  { %1333 = vmatprep.mubr.msk.f32.mxu1 %vm3278_vm11, %v464_v61  ;;  %1597 = vmatpush3.bf16.msra.mxu1 %v1596_v29  ;;  %v1610_v61 = vpack.c.bf16 %v1063_v58, %v1062_v21  ;;  %v1069_v21 = vld [vmem:[%s3067_s5 + $0x1f8] sm:$0xff]  ;;  %vm3282_vm2 = vmmov %vm3279_vm4 }
 0x246   :  { %1599 = vmatprep.subr.bf16.mxu1 %v1598_v3  ;;  %1569 = vmatpush3.bf16.msra.mxu0 %v1568_v35  ;;  %v1584_v35 = vpack.c.bf16 %v1017_v16, %v1016_v14  ;;  %v1021_v58 = vld [vmem:[%s3067_s5 + $0x78] sm:$0xff]  ;;  %vm3283_vm0 = vmmov %vm3274_vm10 }
 0x247   :  { %1571 = vmatprep.subr.bf16.mxu0 %v1570_v10  ;;  %vm3284_vm1 = vmmov %vm3283_vm0 }
 0x248   :  { %888 = vmatmul.mubr.f32.gmra.mrb[6].mxu1 %v463_v44  ;;  %v1580_v44 = vpack.c.bf16 %v1015_v59, %v1014_v43  ;;  %v1052_v43 = vld [vmem:[%s3067_s5 + $0x170] sm:$0xff]  ;;  %vm3285_vm7 = vmmov %vm3283_vm0 }
 0x249   :  { %1601 = vmatpush3.bf16.msra.mxu1 %v1600_v31  ;;  %vm3286_vm9 = vmmov %vm3282_vm2 }
 0x24a   :  { %1603 = vmatprep.subr.bf16.mxu1 %v1602_v36  ;;  %1573 = vmatpush3.bf16.msra.mxu0 %v1572_v42  ;;  %vm3287_vm14 = vmmov %vm3282_vm2 }
 0x24b   :  { %1575 = vmatprep.subr.bf16.mxu0 %v1574_v41  ;;  %vm3288_vm3 = vmmov %vm3282_vm2 }
 0x24c   :  { %vm3289_vm13 = vmmov %vm3282_vm2 }
 0x24d   :  { %1605 = vmatpush3.bf16.msra.mxu1 %v1604_v40  ;;  %v1066_v40 = vld [vmem:[%s3067_s5 + $0x1e0] sm:$0xff]  ;;  %vm3290_vm15 = vmmov %vm3283_vm0 }
 0x24e   :  { %1607 = vmatprep.subr.bf16.mxu1 %v1606_v53  ;;  %1577 = vmatpush3.bf16.msra.mxu0 %v1576_v55  ;;  %v1586_v53 = vpack.c.bf16 %v1035_v39, %v1034_v47  ;;  %v1618_v54 = vpack.c.bf16 %v1067_v19, %v1066_v40  ;;  %v1050_v55 = vld [vmem:[%s3067_s5 + $0x160] sm:$0xff]  ;;  %vm3291_vm5 = vmmov %vm3283_vm0 }
 0x24f   :  { %1579 = vmatprep.subr.bf16.mxu0 %v1578_v23  ;;  %v1020_v23 = vld [vmem:[%s3067_s5 + $0x70] sm:$0xff]  ;;  %vm3292_vm11 = vmmov %vm3283_vm0 }
 0x250   :  { %v1592_v59 = vpack.c.bf16 %v1021_v58, %v1020_v23 }
 0x251   :  { %1609 = vmatpush3.bf16.msra.mxu1 %v1608_v5  ;;  %v1051_v5 = vld [vmem:[%s3067_s5 + $0x168] sm:$0xff] }
 0x252   :  { %1611 = vmatprep.subr.bf16.mxu1 %v1610_v61  ;;  %1581 = vmatpush3.bf16.msra.mxu0 %v1580_v44 }
 0x253   :  { %1583 = vmatprep.subr.bf16.mxu0 %v1582_v6 }
 0x255   :  { %1613 = vmatpush3.bf16.msra.mxu1 %v1612_v1 }
 0x256   :  { %1615 = vmatprep.subr.bf16.mxu1 %v1614_v27  ;;  %1585 = vmatpush3.bf16.msra.mxu0 %v1584_v35 }
 0x257   :  { %1587 = vmatprep.subr.bf16.mxu0 %v1586_v53 }
 0x259   :  { %1617 = vmatpush3.bf16.msra.mxu1 %v1616_v37 }
 0x25a   :  { %1619 = vmatprep.subr.bf16.mxu1 %v1618_v54  ;;  %1589 = vmatpush3.bf16.msra.mxu0 %v1588_v22 }
 0x313   :  { %v806_v15 = vpop.f32.mrb[4].mxu0 }
 0x314   :  { %v807_v50 = vadd.f32 %v806_v15, %v726_v48  ;;  %v808_v34 = vpop.f32.mrb[5].mxu0  ;;  %v1620_v15 = vpack.c.bf16 %v1051_v5, %v1050_v55 }
 0x315   :  { %v809_v45 = vadd.f32 %v808_v34, %v726_v48  ;;  %v1622_v34 = vpack.c.bf16 %v1069_v21, %v1068_v57 }
 0x316   :  { %v2860_v62 = vmax.f32 %v807_v50, 0.0  ;;  %1621 = vmatpush3.bf16.msra.mxu1 %v1620_v15 }
 0x317   :  { %v883_v60 = vpop.f32.mrb[4].mxu1  ;;  %v2871_v8 = vmax.f32 %v809_v45, 0.0  ;;  %v812_v29 = vpop.f32.mrb[6].mxu0  ;;  %v1053_v45 = vld [vmem:[%s3067_s5 + $0x178] sm:$0xff]  ;;  %1623 = vmatprep.subr.bf16.mxu1 %v1622_v34 }
 0x318   :  { %v884_v0 = vadd.f32 %v883_v60, %v726_v48  ;;  %v885_v9 = vpop.f32.mrb[5].mxu1  ;;  %902 = vst [vmem:[%s3068_s6] sm:$0xff] %v2860_v62  ;;  %v813_v17 = vadd.f32 %v812_v29, %v731_v7  ;;  %v814_v24 = vpop.f32.mrb[7].mxu0  ;;  %v1624_v60 = vpack.c.bf16 %v1053_v45, %v1052_v43 }
 0x319   :  { %v886_v12 = vadd.f32 %v885_v9, %v726_v48  ;;  %903 = vst [vmem:[%s3068_s6 + $0x8] sm:$0xff] %v2871_v8  ;;  %v815_v31 = vadd.f32 %v814_v24, %v731_v7  ;;  %v1869_v32 = vpack.i.bf16 %v2871_v8, %v2860_v62  ;;  %v1036_v48 = vld [vmem:[%s3067_s5 + $0xf0] sm:$0xff] }
 0x31a   :  { %v2886_v3 = vmax.f32 %v884_v0, 0.0  ;;  %v2906_v52 = vmax.f32 %v813_v17, 0.0  ;;  %v1590_v50 = vpack.c.bf16 %v1037_v25, %v1036_v48  ;;  %1625 = vmatpush3.bf16.msra.mxu1 %v1624_v60 }
 0x31b   :  { %v2898_v30 = vmax.f32 %v886_v12, 0.0  ;;  %v889_v10 = vpop.f32.mrb[6].mxu1  ;;  %v2912_v38 = vmax.f32 %v815_v31, 0.0  ;;  %1870 = vrot.lane.b32.xlu1 %v1869_v32, %s1933_s12 }
 0x31c   :  { %904 = vst [vmem:[%s3068_s6 + $0x10] sm:$0xff] %v2886_v3  ;;  %v890_v33 = vadd.f32 %v889_v10, %v731_v7  ;;  %v891_v36 = vpop.f32.mrb[7].mxu1  ;;  %906 = vst [vmem:[%s3068_s6 + $0x20] sm:$0xff] %v2906_v52  ;;  %1591 = vmatprep.subr.bf16.mxu0 %v1590_v50 }
 0x31d   :  { %905 = vst [vmem:[%s3068_s6 + $0x18] sm:$0xff] %v2898_v30  ;;  %v892_v18 = vadd.f32 %v891_v36, %v731_v7  ;;  %v1874_v42 = vpack.i.bf16 %v2898_v30, %v2886_v3  ;;  %907 = vst [vmem:[%s3068_s6 + $0x28] sm:$0xff] %v2912_v38  ;;  %v1899_v61 = vpack.i.bf16 %v2912_v38, %v2906_v52  ;;  %1593 = vmatpush3.bf16.msra.mxu0 %v1592_v59 }
 0x31e   :  { %v2921_v46 = vmax.f32 %v890_v33, 0.0 }
 0x31f   :  { %v2936_v41 = vmax.f32 %v892_v18, 0.0  ;;  %1875 = vrot.lane.b32.xlu0 %v1874_v42, %s1933_s12  ;;  %1880 = vrot.lane.b32.xlu1 %v1869_v32, %s1936_s14 }
 0x320   :  { %908 = vst [vmem:[%s3068_s6 + $0x30] sm:$0xff] %v2921_v46 }
 0x321   :  { %909 = vst [vmem:[%s3068_s6 + $0x38] sm:$0xff] %v2936_v41  ;;  %v1904_v44 = vpack.i.bf16 %v2936_v41, %v2921_v46 }
 0x323   :  { %1885 = vrot.lane.b32.xlu0 %v1874_v42, %s1936_s14  ;;  %1890 = vrot.lane.b32.xlu1 %v1869_v32, %s1938_s15 }
 0x327   :  { %1895 = vrot.lane.b32.xlu0 %v1874_v42, %s1938_s15  ;;  %1900 = vrot.lane.b32.xlu1 %v1899_v61, %s1933_s12 }
 0x32b   :  { %1905 = vrot.lane.b32.xlu0 %v1904_v44, %s1933_s12  ;;  %1910 = vrot.lane.b32.xlu1 %v1899_v61, %s1936_s14 }
 0x32f   :  { %1915 = vrot.lane.b32.xlu0 %v1904_v44, %s1936_s14  ;;  %1920 = vrot.lane.b32.xlu1 %v1899_v61, %s1938_s15 }
 0x333   :  { %1925 = vrot.lane.b32.xlu0 %v1904_v44, %s1938_s15 }
 0x38d   :  { %v1871_v49 = vpop.permute.xlu1 %1870 }
 0x38e   :  { %v1873_v0 = vunpack.i.h.bf16 %v1871_v49  ;;  %v1872_v9 = vunpack.i.l.bf16 %v1871_v49 }
 0x390   :  { %v930_v7 = vsel %vm3279_vm4, %v1872_v9, %v1873_v0  ;;  %vm3293_vm4 = vmmov %vm3283_vm0 }
 0x391   :  { %v1876_v26 = vpop.permute.xlu0 %1875  ;;  %v1881_v1 = vpop.permute.xlu1 %1880  ;;  %v934_v17 = vmax.f32 %v2860_v62, %v930_v7 }
 0x392   :  { %v1878_v2 = vunpack.i.h.bf16 %v1876_v26  ;;  %v1877_v4 = vunpack.i.l.bf16 %v1876_v26  ;;  %v1883_v12 = vunpack.i.h.bf16 %v1881_v1  ;;  %v1882_v29 = vunpack.i.l.bf16 %v1881_v1 }
 0x394   :  { %v926_v24 = vsel %vm3280_vm12, %v1877_v4, %v1878_v2  ;;  %v928_v56 = vsel %vm3281_vm6, %v1873_v0, %v1877_v4  ;;  %v932_v28 = vsel %vm3282_vm2, %v1878_v2, %v1872_v9  ;;  %v962_v32 = vsel %vm3274_vm10, %v1882_v29, %v1883_v12 }
 0x395   :  { %v1886_v63 = vpop.permute.xlu0 %1885  ;;  %v1891_v14 = vpop.permute.xlu1 %1890  ;;  %v935_v20 = vmax.f32 %v2871_v8, %v928_v56  ;;  %v936_v54 = vmax.f32 %v2886_v3, %v926_v24  ;;  %v937_v21 = vmax.f32 %v2898_v30, %v932_v28 }
 0x396   :  { %v1888_v6 = vunpack.i.h.bf16 %v1886_v63  ;;  %v1887_v13 = vunpack.i.l.bf16 %v1886_v63  ;;  %v1893_v16 = vunpack.i.h.bf16 %v1891_v14  ;;  %v1892_v27 = vunpack.i.l.bf16 %v1891_v14 }
 0x398   :  { %v958_v33 = vsel %vm3283_vm0, %v1887_v13, %v1888_v6  ;;  %v960_v62 = vsel %vm3284_vm1, %v1883_v12, %v1887_v13  ;;  %v986_v36 = vsel %vm265_vm8, %v1892_v27, %v1893_v16  ;;  %v964_v40 = vsel %vm3285_vm7, %v1888_v6, %v1882_v29 }
 0x399   :  { %v1896_v35 = vpop.permute.xlu0 %1895  ;;  %v1901_v37 = vpop.permute.xlu1 %1900  ;;  %v990_v18 = vmax.f32 %v962_v32, %v986_v36 }
 0x39a   :  { %v1898_v31 = vunpack.i.h.bf16 %v1896_v35  ;;  %v1897_v10 = vunpack.i.l.bf16 %v1896_v35  ;;  %v1903_v22 = vunpack.i.h.bf16 %v1901_v37  ;;  %v1902_v48 = vunpack.i.l.bf16 %v1901_v37 }
 0x39b   :  { %v998_v50 = vmax.f32 %v934_v17, %v990_v18 }
 0x39c   :  { %v982_v42 = vsel %vm265_vm8, %v1897_v10, %v1898_v31  ;;  %v984_v47 = vsel %vm265_vm8, %v1893_v16, %v1897_v10  ;;  %v988_v39 = vsel %vm265_vm8, %v1898_v31, %v1892_v27  ;;  %v931_v44 = vsel %vm3288_vm3, %v1902_v48, %v1903_v22 }
 0x39d   :  { %v992_v19 = vmax.f32 %v958_v33, %v982_v42  ;;  %v1906_v51 = vpop.permute.xlu0 %1905  ;;  %v991_v53 = vmax.f32 %v960_v62, %v984_v47  ;;  %v993_v5 = vmax.f32 %v964_v40, %v988_v39  ;;  %v1911_v25 = vpop.permute.xlu1 %1910  ;;  %v938_v35 = vmax.f32 %v2906_v52, %v931_v44 }
 0x39e   :  { %v1907_v55 = vunpack.i.l.bf16 %v1906_v51  ;;  %v1908_v15 = vunpack.i.h.bf16 %v1906_v51  ;;  %v1913_v43 = vunpack.i.h.bf16 %v1911_v25  ;;  %v1912_v59 = vunpack.i.l.bf16 %v1911_v25 }
 0x39f   :  { %v999_v57 = vmax.f32 %v935_v20, %v991_v53  ;;  %v1000_v34 = vmax.f32 %v936_v54, %v992_v19  ;;  %v1001_v58 = vmax.f32 %v937_v21, %v993_v5 }
 0x3a0   :  { %v929_v8 = vsel %vm3286_vm9, %v1903_v22, %v1907_v55  ;;  %v933_v3 = vsel %vm3287_vm14, %v1908_v15, %v1902_v48  ;;  %v927_v49 = vsel %vm3289_vm13, %v1907_v55, %v1908_v15  ;;  %v963_v1 = vsel %vm3290_vm15, %v1912_v59, %v1913_v43 }
 0x3a1   :  { %v1916_v23 = vpop.permute.xlu0 %1915  ;;  %1134 = vmatprep.mubr.f32.mxu0 %v999_v57  ;;  %1209 = vmatprep.mubr.f32.mxu1 %v1001_v58  ;;  %v1921_v61 = vpop.permute.xlu1 %1920  ;;  %v939_v9 = vmax.f32 %v2912_v38, %v929_v8  ;;  %v941_v63 = vmax.f32 %v2936_v41, %v933_v3  ;;  %v940_v24 = vmax.f32 %v2921_v46, %v927_v49 }
 0x3a2   :  { %1135 = vmatmul.mubr.f32.vlgmr.msra.gmra.mrb[8].mxu0 %v998_v50  ;;  %v1918_v45 = vunpack.i.h.bf16 %v1916_v23  ;;  %v1917_v60 = vunpack.i.l.bf16 %v1916_v23  ;;  %1210 = vmatmul.mubr.f32.vlgmr.msra.gmra.mrb[8].mxu1 %v1000_v34  ;;  %v1923_v30 = vunpack.i.h.bf16 %v1921_v61  ;;  %v1922_v26 = vunpack.i.l.bf16 %v1921_v61 }
 0x3a4   :  { %v959_v7 = vsel %vm3291_vm5, %v1917_v60, %v1918_v45  ;;  %v961_v12 = vsel %vm3292_vm11, %v1913_v43, %v1917_v60  ;;  %v965_v29 = vsel %vm3293_vm4, %v1918_v45, %v1912_v59  ;;  %v987_v6 = vsel %vm265_vm8, %v1922_v26, %v1923_v30 }
 0x3a5   :  { %v1926_v0 = vpop.permute.xlu0 %1925  ;;  %v994_v14 = vmax.f32 %v963_v1, %v987_v6 }
 0x3a6   :  { %v1928_v2 = vunpack.i.h.bf16 %v1926_v0  ;;  %v1927_v4 = vunpack.i.l.bf16 %v1926_v0 }
 0x3a7   :  { %v1002_v10 = vmax.f32 %v938_v35, %v994_v14 }
 0x3a8   :  { %v983_v38 = vsel %vm265_vm8, %v1927_v4, %v1928_v2  ;;  %v985_v13 = vsel %vm265_vm8, %v1923_v30, %v1927_v4  ;;  %v989_v41 = vsel %vm265_vm8, %v1928_v2, %v1922_v26 }
 0x3a9   :  { %v995_v16 = vmax.f32 %v961_v12, %v985_v13  ;;  %v997_v17 = vmax.f32 %v965_v29, %v989_v41  ;;  %v996_v27 = vmax.f32 %v959_v7, %v983_v38 }
 0x3ab   :  { %v1003_v56 = vmax.f32 %v939_v9, %v995_v16  ;;  %v1005_v28 = vmax.f32 %v941_v63, %v997_v17  ;;  %v1004_v31 = vmax.f32 %v940_v24, %v996_v27 }
 0x3ad   :  { %1139 = vmatprep.mubr.f32.mxu0 %v1003_v56  ;;  %1214 = vmatprep.mubr.f32.mxu1 %v1005_v28 }
 0x3ae   :  { %1140 = vmatmul.mubr.f32.gmra.mrb[10].mxu0 %v1002_v10  ;;  %1215 = vmatmul.mubr.f32.gmra.mrb[10].mxu1 %v1004_v31 }
 0x475   :  { %v1366_v32 = vpop.f32.mrb[8].mxu0  ;;  %v1404_v11 = vpop.f32.mrb[8].mxu1 }
 0x476   :  { %v1367_v33 = vpop.f32.mrb[9].mxu0  ;;  %v1405_v36 = vpop.f32.mrb[9].mxu1 }
 0x477   :  { %v1368_v62 = vadd.f32 %v1367_v33, %v1366_v32  ;;  %v1406_v37 = vadd.f32 %v1405_v36, %v1404_v11 }
 0x479   :  { %v1212_v18 = vadd.f32 %v1406_v37, %v1368_v62 }
 0x47b   :  { %1220 = vst [vmem:[%s3069_s7] sm:$0xff] %v1212_v18 }
 0x481   :  { %v1369_v52 = vpop.f32.mrb[10].mxu0  ;;  %v1407_v46 = vpop.f32.mrb[10].mxu1 }
 0x482   :  { %v1370_v42 = vpop.f32.mrb[11].mxu0  ;;  %v1408_v47 = vpop.f32.mrb[11].mxu1 }
 0x483   :  { %v1371_v39 = vadd.f32 %v1370_v42, %v1369_v52  ;;  %v1409_v40 = vadd.f32 %v1408_v47, %v1407_v46 }
 0x485   :  { %v1217_v19 = vadd.f32 %v1409_v40, %v1371_v39 }
 0x487   :  { %1221 = vst [vmem:[%s3069_s7 + $0x8] sm:$0xff] %v1217_v19 }

</bundles_post_ra>
